<compile_context>
chip_gen: v5e
topology: v5e:2x2
jax: 0.10.0
libtpu: 0.0.40
codegen_flags: <defaults>
</compile_context>

<pallas_src>
import functools

import numpy as np

import jax
import jax.numpy as jnp
from jax.experimental import pallas as pl
from jax.experimental.pallas import tpu as pltpu

NEG_SLOPE = 0.01
_SUBLANE = 8  # f32 sublane tile


# ------------------------------ static layer tables ------------------------------

def _layer_defs():
    """Tap-offset table per conv layer, in packing / execution order."""
    def spatial(dil):
        return tuple(((ki - 1) * dil, (kj - 1) * dil)
                     for ki in range(3) for kj in range(3))

    def spectral(k):
        return tuple((kd - k // 2, 0) for kd in range(k))

    return (
        ("conv2d1", spatial(1)),   # DilatedConvBlock k=3, dilation=1
        ("conv2d2", spatial(2)),   # DilatedConvBlock k=3, dilation=2
        ("conv3d1", spectral(3)),  # Conv3d(3,1,1) on h.unsqueeze(-1) == 1-D conv along H
        ("conv3d2", spectral(3)),
        ("conv3d3", spectral(3)),
        ("conv3d4", spectral(5)),  # Conv3d(5,1,1)
        ("conv3d5", spectral(5)),
        ("conv3d6", spectral(5)),
        ("spefe",   ((0, 0),)),    # 1x1 conv
    )


def _unique_nonzero_offsets(layers):
    seen = []
    for _, offs in layers:
        for off in offs:
            if off != (0, 0) and off not in seen:
                seen.append(off)
    return tuple(seen)


def _leaky_relu(y, neg_slope):
    return jnp.where(y >= 0, y, neg_slope * y)


# ----------------------------------- kernel --------------------------------------

def _msab_kernel(x_ref, mask_ref, w_ref, b_ref, o_ref, *,
                 layers, unique_offsets, col_starts, C, C_pad, W, L,
                 neg_slope, compute_dtype):
    x = x_ref[...]                      # (C_pad, L) f32; images concatenated on lanes
    w_all = w_ref[...]                  # (C_pad, total_cols) compute_dtype (pre-cast)

    # Boundary-mask rows: loaded ONCE per grid step and reused by every layer that
    # shares the same (dh, dw) offset (host precomputed -> no iota / integer divide).
    mask_row = {off: mask_ref[i] for i, off in enumerate(unique_offsets)}   # (1, L)

    def conv_layer(h, layer_idx):
        _, offsets = layers[layer_idx]
        n_taps = len(offsets)
        k_cols = n_taps * C_pad
        col0 = col_starts[layer_idx]

        # In-register tap formation: circular lane roll (XLU) + positional mask (VPU).
        taps = []
        for (dh, dw) in offsets:
            delta = dh * W + dw
            t = h if delta == 0 else pltpu.roll(h, shift=(-delta) % L, axis=1)
            if (dh, dw) != (0, 0):
                t = t * mask_row[(dh, dw)]
            taps.append(t)

        # Tap-stacked GEMM: ONE MXU contraction of size n_taps*C_pad per layer
        # (accumulation stays in the MXU) with a single dtype cast per layer.
        stack = taps[0] if n_taps == 1 else jnp.concatenate(taps, axis=0)
        acc = jnp.dot(w_all[:, col0:col0 + k_cols],          # lane-aligned static slice
                      stack.astype(compute_dtype),
                      preferred_element_type=jnp.float32)
        acc = acc + b_ref[layer_idx]                          # (C_pad, 1) lane-broadcast
        return _leaky_relu(acc, neg_slope)                    # f32 (C_pad, L)

    # h = conv2d2(conv2d1(F_in))
    h = conv_layer(x, 0)
    h = conv_layer(h, 1)

    # conv3image: three Conv3d(3,1,1) + LeakyReLU
    c3 = conv_layer(h, 2)
    c3 = conv_layer(c3, 3)
    c3 = conv_layer(c3, 4)

    # conv5image: three Conv3d(5,1,1) + LeakyReLU
    c5 = conv_layer(h, 5)
    c5 = conv_layer(c5, 6)
    c5 = conv_layer(c5, 7)

    # spefe(h): 1x1 conv + LeakyReLU
    hs = conv_layer(h, 8)

    # F_mid = softmax(conv3 + conv5) over channels; F_out = F_mid * spefe(h).
    # Padded channel rows are dropped BEFORE the softmax so they cannot pollute the
    # denominator.
    s = c3 + c5
    if C_pad != C:
        s, hs = s[:C, :], hs[:C, :]
    m = jnp.max(s, axis=0, keepdims=True)
    e = jnp.exp(s - m)
    denom = jnp.sum(e, axis=0, keepdims=True)
    o_ref[...] = (e * pl.reciprocal(denom, approx=True) * hs).astype(o_ref.dtype)


# ------------------------------ host-side packing ---------------------------------

def _pack_weights(params, layers, C, C_pad, compute_dtype):
    """Pack all conv weights into one lane-aligned (C_pad, total_cols) slab and all
    biases into one (n_layers, C_pad, 1) slab.  Column block t of a layer holds the
    (C_out, C_in) mixing matrix of tap t, zero-padded to C_pad channels."""
    def taps_of(name):
        w, _ = params[name]
        if name in ("conv2d1", "conv2d2"):            # (C, C, 3, 3), tap t = ki*3 + kj
            return w.transpose(2, 3, 0, 1).reshape(9, C, C)
        if name == "spefe":                           # (C, C, 1, 1)
            return w.reshape(1, C, C)
        return w[:, :, :, 0, 0].transpose(2, 0, 1)    # (C, C, k, 1, 1), tap t = kd

    col_starts, blocks, col = [], [], 0
    for name, offsets in layers:
        n_taps = len(offsets)
        wt = jnp.zeros((n_taps, C_pad, C_pad), jnp.float32).at[:, :C, :C].set(taps_of(name))
        blocks.append((col, wt.transpose(1, 0, 2).reshape(C_pad, n_taps * C_pad)))
        col_starts.append(col)
        col += pl.cdiv(n_taps * C_pad, 128) * 128     # 128-lane-align every layer block

    w_packed = jnp.zeros((C_pad, col), jnp.float32)
    for start, blk in blocks:
        w_packed = w_packed.at[:, start:start + blk.shape[1]].set(blk)

    b_packed = jnp.stack(
        [jnp.zeros((C_pad,), jnp.float32).at[:C].set(params[name][1]) for name, _ in layers]
    ).reshape(len(layers), C_pad, 1)

    return w_packed.astype(compute_dtype), b_packed, tuple(col_starts)


def _build_masks(unique_offsets, B, H, W):
    """{0,1} boundary masks, one row per unique (dh, dw) tap offset, over the lane axis
    of B images laid side by side (positions taken modulo H*W, so roll-wrap across image
    boundaries is zeroed too).  Computed on the host -> compile-time constants."""
    HW = H * W
    pos = np.arange(B * HW) % HW
    hh, ww = pos // W, pos % W
    rows = []
    for dh, dw in unique_offsets:
        m = np.ones(B * HW, dtype=bool)
        if dh > 0:
            m &= hh < (H - dh)
        elif dh < 0:
            m &= hh >= -dh
        if dw > 0:
            m &= ww < (W - dw)
        elif dw < 0:
            m &= ww >= -dw
        rows.append(m)
    return jnp.asarray(np.stack(rows)[:, None, :].astype(np.float32))


# ---------------------------------- wrapper ---------------------------------------

def msab_forward(x, params, *, compute_dtype=jnp.bfloat16, images_per_step=None):
    """MSAB forward.  x: (N, C, H, W) float32 NCHW.  Returns (N, C, H, W) float32.

    compute_dtype controls only the MXU matmul operands (accumulation, bias, LeakyReLU
    and softmax always stay f32); bfloat16 is the right default on v6e/v7x and matches
    v5e guidance of casting at the dot operands only.  Pass jnp.float32 to stay closer
    to the f32 reference numerics."""
    N, C, H, W = x.shape
    HW = H * W
    layers = _layer_defs()
    unique_offsets = _unique_nonzero_offsets(layers)
    C_pad = pl.cdiv(C, _SUBLANE) * _SUBLANE

    # Images per grid step: amortize per-step overhead while keeping >= 2 grid steps
    # (pipeline overlap + both v7x TensorCores busy).
    if images_per_step is None:
        images_per_step = 1
        for b in range(N, 0, -1):
            if N % b == 0 and N // b >= 2:
                images_per_step = b
                break
    B = images_per_step
    assert N % B == 0, "images_per_step must divide the batch size"
    G = N // B
    L = B * HW

    # Channel-pad and lay out as (G, C_pad, L) with B images side by side on lanes.
    if C_pad != C:
        x = jnp.pad(x, ((0, 0), (0, C_pad - C), (0, 0), (0, 0)))
    if B == 1:
        x_grp = x.reshape(G, C_pad, L)
    else:
        x_grp = x.reshape(G, B, C_pad, HW).transpose(0, 2, 1, 3).reshape(G, C_pad, L)

    w_packed, b_packed, col_starts = _pack_weights(params, layers, C, C_pad, compute_dtype)
    masks = _build_masks(unique_offsets, B, H, W)

    kern = functools.partial(
        _msab_kernel, layers=layers, unique_offsets=unique_offsets,
        col_starts=col_starts, C=C, C_pad=C_pad, W=W, L=L,
        neg_slope=NEG_SLOPE, compute_dtype=compute_dtype)

    act_in_spec = pl.BlockSpec((None, C_pad, L), lambda g: (g, 0, 0))
    out_spec = pl.BlockSpec((None, C, L), lambda g: (g, 0, 0))

    def full(arr):
        nd = arr.ndim
        return pl.BlockSpec(arr.shape, lambda g: (0,) * nd)

    # VMEM budget from the actual per-step footprint (generous 2x safety margin).
    itemsize = jnp.dtype(compute_dtype).itemsize
    block_bytes = C_pad * L * 4
    const_bytes = (w_packed.size * itemsize + b_packed.size * 4 + masks.size * 4)
    stack_bytes = 9 * C_pad * L * (4 + itemsize)          # f32 taps + casted stack
    live_bytes = 10 * block_bytes + stack_bytes           # x, h, c3/c5 chains, hs, softmax
    vmem_limit = int(min(128 * 2**20,
                         max(8 * 2**20, 2 * (4 * block_bytes + const_bytes + live_bytes))))

    total_k = 43 * C_pad                                   # sum of per-layer contraction sizes
    cost = pl.CostEstimate(
        flops=2 * G * L * C_pad * total_k,
        transcendentals=N * HW * (C + 1),
        bytes_accessed=4 * (x_grp.size + N * C * HW) + const_bytes,
    )

    out = pl.pallas_call(
        kern,
        out_shape=jax.ShapeDtypeStruct((G, C, L), jnp.float32),
        grid=(G,),
        in_specs=[act_in_spec, full(masks), full(w_packed), full(b_packed)],
        out_specs=out_spec,
        compiler_params=pltpu.CompilerParams(
            dimension_semantics=("parallel",),             # shard grid across v7x TCs
            vmem_limit_bytes=vmem_limit,
        ),
        cost_estimate=cost,
    )(x_grp, masks, w_packed, b_packed)

    if B == 1:
        return out.reshape(N, C, H, W)
    return out.reshape(G, C, B, HW).transpose(0, 2, 1, 3).reshape(N, C, H, W)


# ----------------------------------- params ---------------------------------------

def init_params(key, C):
    """Deterministic PyTorch-style (uniform +/- 1/sqrt(fan_in)) conv parameters."""
    def conv(k, shape):
        fan_in = 1
        for d in shape[1:]:
            fan_in *= d
        bound = 1.0 / float(fan_in) ** 0.5
        kw, kb = jax.random.split(k)
        w = jax.random.uniform(kw, shape, jnp.float32, -bound, bound)
        b = jax.random.uniform(kb, (shape[0],), jnp.float32, -bound, bound)
        return w, b

    ks = jax.random.split(key, 9)
    return {
        "conv2d1": conv(ks[0], (C, C, 3, 3)),
        "conv2d2": conv(ks[1], (C, C, 3, 3)),
        "conv3d1": conv(ks[2], (C, C, 3, 1, 1)),
        "conv3d2": conv(ks[3], (C, C, 3, 1, 1)),
        "conv3d3": conv(ks[4], (C, C, 3, 1, 1)),
        "conv3d4": conv(ks[5], (C, C, 5, 1, 1)),
        "conv3d5": conv(ks[6], (C, C, 5, 1, 1)),
        "conv3d6": conv(ks[7], (C, C, 5, 1, 1)),
        "spefe":   conv(ks[8], (C, C, 1, 1)),
    }


if __name__ == "__main__":
    key = jax.random.PRNGKey(0)
    kx, kp = jax.random.split(key)
    N, C, H, W = 2, 4, 16, 16
    x = jax.random.normal(kx, (N, C, H, W), jnp.float32)
    params = init_params(kp, C)

    out = jax.jit(msab_forward)(x, params)
    out = jax.block_until_ready(out)
    assert out.shape == (N, C, H, W) and out.dtype == jnp.float32
    print("KERNEL_OK")
</pallas_src>

<mosaic_0001>
module attributes {stable_mosaic.version = 11 : i64} {
  func.func @_msab_kernel(%arg0: i32, %arg1: memref<1x8x256xf32, #tpu.memory_space<vmem>>, %arg2: memref<16x1x256xf32, #tpu.memory_space<vmem>>, %arg3: memref<8x1152xbf16, #tpu.memory_space<vmem>>, %arg4: memref<9x8x1xf32, #tpu.memory_space<vmem>>, %arg5: memref<1x4x256xf32, #tpu.memory_space<vmem>>) attributes {dimension_semantics = [#tpu.dimension_semantics<parallel>], iteration_bounds = array<i64: 2>, scalar_prefetch = 0 : i64, scratch_operands = 0 : i64, tpu.core_type = #tpu.core_type<tc>, window_params = [{transform_indices = @transform_0, window_bounds = array<i64: 1, 8, 256>}, {pipeline_mode = #tpu.pipeline_mode<synchronous>, transform_indices = @transform_1, window_bounds = array<i64: 16, 1, 256>}, {pipeline_mode = #tpu.pipeline_mode<synchronous>, transform_indices = @transform_2, window_bounds = array<i64: 8, 1152>}, {pipeline_mode = #tpu.pipeline_mode<synchronous>, transform_indices = @transform_3, window_bounds = array<i64: 9, 8, 1>}, {transform_indices = @transform_4, window_bounds = array<i64: 1, 4, 256>}]} {
    %c0 = arith.constant 0 : index
    %c0_0 = arith.constant 0 : index
    %c0_1 = arith.constant 0 : index
    %0 = vector.load %arg1[%c0, %c0_0, %c0_1] : memref<1x8x256xf32, #tpu.memory_space<vmem>>, vector<1x8x256xf32>
    %1 = vector.shape_cast %0 : vector<1x8x256xf32> to vector<8x256xf32>
    %c0_2 = arith.constant 0 : index
    %c0_3 = arith.constant 0 : index
    %2 = vector.load %arg3[%c0_2, %c0_3] : memref<8x1152xbf16, #tpu.memory_space<vmem>>, vector<8x1152xbf16>
    %c0_4 = arith.constant 0 : index
    %c0_5 = arith.constant 0 : index
    %c0_6 = arith.constant 0 : index
    %3 = vector.load %arg2[%c0_4, %c0_5, %c0_6] : memref<16x1x256xf32, #tpu.memory_space<vmem>>, vector<1x1x256xf32>
    %4 = vector.shape_cast %3 : vector<1x1x256xf32> to vector<1x256xf32>
    %c1 = arith.constant 1 : index
    %c0_7 = arith.constant 0 : index
    %c0_8 = arith.constant 0 : index
    %5 = vector.load %arg2[%c1, %c0_7, %c0_8] : memref<16x1x256xf32, #tpu.memory_space<vmem>>, vector<1x1x256xf32>
    %6 = vector.shape_cast %5 : vector<1x1x256xf32> to vector<1x256xf32>
    %c2 = arith.constant 2 : index
    %c0_9 = arith.constant 0 : index
    %c0_10 = arith.constant 0 : index
    %7 = vector.load %arg2[%c2, %c0_9, %c0_10] : memref<16x1x256xf32, #tpu.memory_space<vmem>>, vector<1x1x256xf32>
    %8 = vector.shape_cast %7 : vector<1x1x256xf32> to vector<1x256xf32>
    %c3 = arith.constant 3 : index
    %c0_11 = arith.constant 0 : index
    %c0_12 = arith.constant 0 : index
    %9 = vector.load %arg2[%c3, %c0_11, %c0_12] : memref<16x1x256xf32, #tpu.memory_space<vmem>>, vector<1x1x256xf32>
    %10 = vector.shape_cast %9 : vector<1x1x256xf32> to vector<1x256xf32>
    %c4 = arith.constant 4 : index
    %c0_13 = arith.constant 0 : index
    %c0_14 = arith.constant 0 : index
    %11 = vector.load %arg2[%c4, %c0_13, %c0_14] : memref<16x1x256xf32, #tpu.memory_space<vmem>>, vector<1x1x256xf32>
    %12 = vector.shape_cast %11 : vector<1x1x256xf32> to vector<1x256xf32>
    %c5 = arith.constant 5 : index
    %c0_15 = arith.constant 0 : index
    %c0_16 = arith.constant 0 : index
    %13 = vector.load %arg2[%c5, %c0_15, %c0_16] : memref<16x1x256xf32, #tpu.memory_space<vmem>>, vector<1x1x256xf32>
    %14 = vector.shape_cast %13 : vector<1x1x256xf32> to vector<1x256xf32>
    %c6 = arith.constant 6 : index
    %c0_17 = arith.constant 0 : index
    %c0_18 = arith.constant 0 : index
    %15 = vector.load %arg2[%c6, %c0_17, %c0_18] : memref<16x1x256xf32, #tpu.memory_space<vmem>>, vector<1x1x256xf32>
    %16 = vector.shape_cast %15 : vector<1x1x256xf32> to vector<1x256xf32>
    %c7 = arith.constant 7 : index
    %c0_19 = arith.constant 0 : index
    %c0_20 = arith.constant 0 : index
    %17 = vector.load %arg2[%c7, %c0_19, %c0_20] : memref<16x1x256xf32, #tpu.memory_space<vmem>>, vector<1x1x256xf32>
    %18 = vector.shape_cast %17 : vector<1x1x256xf32> to vector<1x256xf32>
    %c8 = arith.constant 8 : index
    %c0_21 = arith.constant 0 : index
    %c0_22 = arith.constant 0 : index
    %19 = vector.load %arg2[%c8, %c0_21, %c0_22] : memref<16x1x256xf32, #tpu.memory_space<vmem>>, vector<1x1x256xf32>
    %20 = vector.shape_cast %19 : vector<1x1x256xf32> to vector<1x256xf32>
    %c9 = arith.constant 9 : index
    %c0_23 = arith.constant 0 : index
    %c0_24 = arith.constant 0 : index
    %21 = vector.load %arg2[%c9, %c0_23, %c0_24] : memref<16x1x256xf32, #tpu.memory_space<vmem>>, vector<1x1x256xf32>
    %22 = vector.shape_cast %21 : vector<1x1x256xf32> to vector<1x256xf32>
    %c10 = arith.constant 10 : index
    %c0_25 = arith.constant 0 : index
    %c0_26 = arith.constant 0 : index
    %23 = vector.load %arg2[%c10, %c0_25, %c0_26] : memref<16x1x256xf32, #tpu.memory_space<vmem>>, vector<1x1x256xf32>
    %24 = vector.shape_cast %23 : vector<1x1x256xf32> to vector<1x256xf32>
    %c11 = arith.constant 11 : index
    %c0_27 = arith.constant 0 : index
    %c0_28 = arith.constant 0 : index
    %25 = vector.load %arg2[%c11, %c0_27, %c0_28] : memref<16x1x256xf32, #tpu.memory_space<vmem>>, vector<1x1x256xf32>
    %26 = vector.shape_cast %25 : vector<1x1x256xf32> to vector<1x256xf32>
    %c12 = arith.constant 12 : index
    %c0_29 = arith.constant 0 : index
    %c0_30 = arith.constant 0 : index
    %27 = vector.load %arg2[%c12, %c0_29, %c0_30] : memref<16x1x256xf32, #tpu.memory_space<vmem>>, vector<1x1x256xf32>
    %28 = vector.shape_cast %27 : vector<1x1x256xf32> to vector<1x256xf32>
    %c13 = arith.constant 13 : index
    %c0_31 = arith.constant 0 : index
    %c0_32 = arith.constant 0 : index
    %29 = vector.load %arg2[%c13, %c0_31, %c0_32] : memref<16x1x256xf32, #tpu.memory_space<vmem>>, vector<1x1x256xf32>
    %30 = vector.shape_cast %29 : vector<1x1x256xf32> to vector<1x256xf32>
    %c14 = arith.constant 14 : index
    %c0_33 = arith.constant 0 : index
    %c0_34 = arith.constant 0 : index
    %31 = vector.load %arg2[%c14, %c0_33, %c0_34] : memref<16x1x256xf32, #tpu.memory_space<vmem>>, vector<1x1x256xf32>
    %32 = vector.shape_cast %31 : vector<1x1x256xf32> to vector<1x256xf32>
    %c15 = arith.constant 15 : index
    %c0_35 = arith.constant 0 : index
    %c0_36 = arith.constant 0 : index
    %33 = vector.load %arg2[%c15, %c0_35, %c0_36] : memref<16x1x256xf32, #tpu.memory_space<vmem>>, vector<1x1x256xf32>
    %34 = vector.shape_cast %33 : vector<1x1x256xf32> to vector<1x256xf32>
    %c17_i32 = arith.constant 17 : i32
    %35 = tpu.dynamic_rotate %1 by %c17_i32 dim 1 : vector<8x256xf32>, i32 -> vector<8x256xf32>
    %36 = vector.broadcast %4 : vector<1x256xf32> to vector<8x256xf32>
    %37 = arith.mulf %35, %36 : vector<8x256xf32>
    %c16_i32 = arith.constant 16 : i32
    %38 = tpu.dynamic_rotate %1 by %c16_i32 dim 1 : vector<8x256xf32>, i32 -> vector<8x256xf32>
    %39 = vector.broadcast %6 : vector<1x256xf32> to vector<8x256xf32>
    %40 = arith.mulf %38, %39 : vector<8x256xf32>
    %c15_i32 = arith.constant 15 : i32
    %41 = tpu.dynamic_rotate %1 by %c15_i32 dim 1 : vector<8x256xf32>, i32 -> vector<8x256xf32>
    %42 = vector.broadcast %8 : vector<1x256xf32> to vector<8x256xf32>
    %43 = arith.mulf %41, %42 : vector<8x256xf32>
    %c1_i32 = arith.constant 1 : i32
    %44 = tpu.dynamic_rotate %1 by %c1_i32 dim 1 : vector<8x256xf32>, i32 -> vector<8x256xf32>
    %45 = vector.broadcast %10 : vector<1x256xf32> to vector<8x256xf32>
    %46 = arith.mulf %44, %45 : vector<8x256xf32>
    %c255_i32 = arith.constant 255 : i32
    %47 = tpu.dynamic_rotate %1 by %c255_i32 dim 1 : vector<8x256xf32>, i32 -> vector<8x256xf32>
    %48 = vector.broadcast %12 : vector<1x256xf32> to vector<8x256xf32>
    %49 = arith.mulf %47, %48 : vector<8x256xf32>
    %c241_i32 = arith.constant 241 : i32
    %50 = tpu.dynamic_rotate %1 by %c241_i32 dim 1 : vector<8x256xf32>, i32 -> vector<8x256xf32>
    %51 = vector.broadcast %14 : vector<1x256xf32> to vector<8x256xf32>
    %52 = arith.mulf %50, %51 : vector<8x256xf32>
    %c240_i32 = arith.constant 240 : i32
    %53 = tpu.dynamic_rotate %1 by %c240_i32 dim 1 : vector<8x256xf32>, i32 -> vector<8x256xf32>
    %54 = vector.broadcast %16 : vector<1x256xf32> to vector<8x256xf32>
    %55 = arith.mulf %53, %54 : vector<8x256xf32>
    %c239_i32 = arith.constant 239 : i32
    %56 = tpu.dynamic_rotate %1 by %c239_i32 dim 1 : vector<8x256xf32>, i32 -> vector<8x256xf32>
    %57 = vector.broadcast %18 : vector<1x256xf32> to vector<8x256xf32>
    %58 = arith.mulf %56, %57 : vector<8x256xf32>
    %59 = tpu.concatenate %37, %40, %43, %46, %1, %49, %52, %55, %58 in 0 : vector<8x256xf32>, vector<8x256xf32>, vector<8x256xf32>, vector<8x256xf32>, vector<8x256xf32>, vector<8x256xf32>, vector<8x256xf32>, vector<8x256xf32>, vector<8x256xf32> -> vector<72x256xf32>
    %60 = vector.extract_strided_slice %2 {offsets = [0, 0], sizes = [8, 72], strides = [1, 1]} : vector<8x1152xbf16> to vector<8x72xbf16>
    %61 = arith.truncf %59 : vector<72x256xf32> to vector<72x256xbf16>
    %cst = arith.constant dense<0.000000e+00> : vector<8x256xf32>
    %62 = tpu.matmul %60, %61, %cst {dimension_numbers = #tpu.dot_dimension_numbers<[1], [0], [0], [1], [0, 0, 1, 1], [], []>} : vector<8x72xbf16>, vector<72x256xbf16>, vector<8x256xf32> -> vector<8x256xf32>
    %c0_37 = arith.constant 0 : index
    %c0_38 = arith.constant 0 : index
    %c0_39 = arith.constant 0 : index
    %63 = vector.load %arg4[%c0_37, %c0_38, %c0_39] : memref<9x8x1xf32, #tpu.memory_space<vmem>>, vector<1x8x1xf32>
    %64 = vector.shape_cast %63 : vector<1x8x1xf32> to vector<8x1xf32>
    %65 = vector.broadcast %64 : vector<8x1xf32> to vector<8x256xf32>
    %66 = arith.addf %62, %65 : vector<8x256xf32>
    %cst_40 = arith.constant 0.000000e+00 : f32
    %67 = vector.broadcast %cst_40 : f32 to vector<8x256xf32>
    %68 = arith.cmpf oge, %66, %67 : vector<8x256xf32>
    %cst_41 = arith.constant 0.00999999977 : f32
    %69 = vector.broadcast %cst_41 : f32 to vector<8x256xf32>
    %70 = arith.mulf %69, %66 : vector<8x256xf32>
    %71 = arith.select %68, %66, %70 : vector<8x256xi1>, vector<8x256xf32>
    %c34_i32 = arith.constant 34 : i32
    %72 = tpu.dynamic_rotate %71 by %c34_i32 dim 1 : vector<8x256xf32>, i32 -> vector<8x256xf32>
    %73 = vector.broadcast %20 : vector<1x256xf32> to vector<8x256xf32>
    %74 = arith.mulf %72, %73 : vector<8x256xf32>
    %c32_i32 = arith.constant 32 : i32
    %75 = tpu.dynamic_rotate %71 by %c32_i32 dim 1 : vector<8x256xf32>, i32 -> vector<8x256xf32>
    %76 = vector.broadcast %22 : vector<1x256xf32> to vector<8x256xf32>
    %77 = arith.mulf %75, %76 : vector<8x256xf32>
    %c30_i32 = arith.constant 30 : i32
    %78 = tpu.dynamic_rotate %71 by %c30_i32 dim 1 : vector<8x256xf32>, i32 -> vector<8x256xf32>
    %79 = vector.broadcast %24 : vector<1x256xf32> to vector<8x256xf32>
    %80 = arith.mulf %78, %79 : vector<8x256xf32>
    %c2_i32 = arith.constant 2 : i32
    %81 = tpu.dynamic_rotate %71 by %c2_i32 dim 1 : vector<8x256xf32>, i32 -> vector<8x256xf32>
    %82 = vector.broadcast %26 : vector<1x256xf32> to vector<8x256xf32>
    %83 = arith.mulf %81, %82 : vector<8x256xf32>
    %c254_i32 = arith.constant 254 : i32
    %84 = tpu.dynamic_rotate %71 by %c254_i32 dim 1 : vector<8x256xf32>, i32 -> vector<8x256xf32>
    %85 = vector.broadcast %28 : vector<1x256xf32> to vector<8x256xf32>
    %86 = arith.mulf %84, %85 : vector<8x256xf32>
    %c226_i32 = arith.constant 226 : i32
    %87 = tpu.dynamic_rotate %71 by %c226_i32 dim 1 : vector<8x256xf32>, i32 -> vector<8x256xf32>
    %88 = vector.broadcast %30 : vector<1x256xf32> to vector<8x256xf32>
    %89 = arith.mulf %87, %88 : vector<8x256xf32>
    %c224_i32 = arith.constant 224 : i32
    %90 = tpu.dynamic_rotate %71 by %c224_i32 dim 1 : vector<8x256xf32>, i32 -> vector<8x256xf32>
    %91 = vector.broadcast %32 : vector<1x256xf32> to vector<8x256xf32>
    %92 = arith.mulf %90, %91 : vector<8x256xf32>
    %c222_i32 = arith.constant 222 : i32
    %93 = tpu.dynamic_rotate %71 by %c222_i32 dim 1 : vector<8x256xf32>, i32 -> vector<8x256xf32>
    %94 = vector.broadcast %34 : vector<1x256xf32> to vector<8x256xf32>
    %95 = arith.mulf %93, %94 : vector<8x256xf32>
    %96 = tpu.concatenate %74, %77, %80, %83, %71, %86, %89, %92, %95 in 0 : vector<8x256xf32>, vector<8x256xf32>, vector<8x256xf32>, vector<8x256xf32>, vector<8x256xf32>, vector<8x256xf32>, vector<8x256xf32>, vector<8x256xf32>, vector<8x256xf32> -> vector<72x256xf32>
    %97 = vector.extract_strided_slice %2 {offsets = [0, 128], sizes = [8, 72], strides = [1, 1]} : vector<8x1152xbf16> to vector<8x72xbf16>
    %98 = arith.truncf %96 : vector<72x256xf32> to vector<72x256xbf16>
    %cst_42 = arith.constant dense<0.000000e+00> : vector<8x256xf32>
    %99 = tpu.matmul %97, %98, %cst_42 {dimension_numbers = #tpu.dot_dimension_numbers<[1], [0], [0], [1], [0, 0, 1, 1], [], []>} : vector<8x72xbf16>, vector<72x256xbf16>, vector<8x256xf32> -> vector<8x256xf32>
    %c1_43 = arith.constant 1 : index
    %c0_44 = arith.constant 0 : index
    %c0_45 = arith.constant 0 : index
    %100 = vector.load %arg4[%c1_43, %c0_44, %c0_45] : memref<9x8x1xf32, #tpu.memory_space<vmem>>, vector<1x8x1xf32>
    %101 = vector.shape_cast %100 : vector<1x8x1xf32> to vector<8x1xf32>
    %102 = vector.broadcast %101 : vector<8x1xf32> to vector<8x256xf32>
    %103 = arith.addf %99, %102 : vector<8x256xf32>
    %cst_46 = arith.constant 0.000000e+00 : f32
    %104 = vector.broadcast %cst_46 : f32 to vector<8x256xf32>
    %105 = arith.cmpf oge, %103, %104 : vector<8x256xf32>
    %cst_47 = arith.constant 0.00999999977 : f32
    %106 = vector.broadcast %cst_47 : f32 to vector<8x256xf32>
    %107 = arith.mulf %106, %103 : vector<8x256xf32>
    %108 = arith.select %105, %103, %107 : vector<8x256xi1>, vector<8x256xf32>
    %c16_i32_48 = arith.constant 16 : i32
    %109 = tpu.dynamic_rotate %108 by %c16_i32_48 dim 1 : vector<8x256xf32>, i32 -> vector<8x256xf32>
    %110 = vector.broadcast %6 : vector<1x256xf32> to vector<8x256xf32>
    %111 = arith.mulf %109, %110 : vector<8x256xf32>
    %c240_i32_49 = arith.constant 240 : i32
    %112 = tpu.dynamic_rotate %108 by %c240_i32_49 dim 1 : vector<8x256xf32>, i32 -> vector<8x256xf32>
    %113 = vector.broadcast %16 : vector<1x256xf32> to vector<8x256xf32>
    %114 = arith.mulf %112, %113 : vector<8x256xf32>
    %115 = tpu.concatenate %111, %108, %114 in 0 : vector<8x256xf32>, vector<8x256xf32>, vector<8x256xf32> -> vector<24x256xf32>
    %116 = vector.extract_strided_slice %2 {offsets = [0, 256], sizes = [8, 24], strides = [1, 1]} : vector<8x1152xbf16> to vector<8x24xbf16>
    %117 = arith.truncf %115 : vector<24x256xf32> to vector<24x256xbf16>
    %cst_50 = arith.constant dense<0.000000e+00> : vector<8x256xf32>
    %118 = tpu.matmul %116, %117, %cst_50 {dimension_numbers = #tpu.dot_dimension_numbers<[1], [0], [0], [1], [0, 0, 1, 1], [], []>} : vector<8x24xbf16>, vector<24x256xbf16>, vector<8x256xf32> -> vector<8x256xf32>
    %c2_51 = arith.constant 2 : index
    %c0_52 = arith.constant 0 : index
    %c0_53 = arith.constant 0 : index
    %119 = vector.load %arg4[%c2_51, %c0_52, %c0_53] : memref<9x8x1xf32, #tpu.memory_space<vmem>>, vector<1x8x1xf32>
    %120 = vector.shape_cast %119 : vector<1x8x1xf32> to vector<8x1xf32>
    %121 = vector.broadcast %120 : vector<8x1xf32> to vector<8x256xf32>
    %122 = arith.addf %118, %121 : vector<8x256xf32>
    %cst_54 = arith.constant 0.000000e+00 : f32
    %123 = vector.broadcast %cst_54 : f32 to vector<8x256xf32>
    %124 = arith.cmpf oge, %122, %123 : vector<8x256xf32>
    %cst_55 = arith.constant 0.00999999977 : f32
    %125 = vector.broadcast %cst_55 : f32 to vector<8x256xf32>
    %126 = arith.mulf %125, %122 : vector<8x256xf32>
    %127 = arith.select %124, %122, %126 : vector<8x256xi1>, vector<8x256xf32>
    %c16_i32_56 = arith.constant 16 : i32
    %128 = tpu.dynamic_rotate %127 by %c16_i32_56 dim 1 : vector<8x256xf32>, i32 -> vector<8x256xf32>
    %129 = vector.broadcast %6 : vector<1x256xf32> to vector<8x256xf32>
    %130 = arith.mulf %128, %129 : vector<8x256xf32>
    %c240_i32_57 = arith.constant 240 : i32
    %131 = tpu.dynamic_rotate %127 by %c240_i32_57 dim 1 : vector<8x256xf32>, i32 -> vector<8x256xf32>
    %132 = vector.broadcast %16 : vector<1x256xf32> to vector<8x256xf32>
    %133 = arith.mulf %131, %132 : vector<8x256xf32>
    %134 = tpu.concatenate %130, %127, %133 in 0 : vector<8x256xf32>, vector<8x256xf32>, vector<8x256xf32> -> vector<24x256xf32>
    %135 = vector.extract_strided_slice %2 {offsets = [0, 384], sizes = [8, 24], strides = [1, 1]} : vector<8x1152xbf16> to vector<8x24xbf16>
    %136 = arith.truncf %134 : vector<24x256xf32> to vector<24x256xbf16>
    %cst_58 = arith.constant dense<0.000000e+00> : vector<8x256xf32>
    %137 = tpu.matmul %135, %136, %cst_58 {dimension_numbers = #tpu.dot_dimension_numbers<[1], [0], [0], [1], [0, 0, 1, 1], [], []>} : vector<8x24xbf16>, vector<24x256xbf16>, vector<8x256xf32> -> vector<8x256xf32>
    %c3_59 = arith.constant 3 : index
    %c0_60 = arith.constant 0 : index
    %c0_61 = arith.constant 0 : index
    %138 = vector.load %arg4[%c3_59, %c0_60, %c0_61] : memref<9x8x1xf32, #tpu.memory_space<vmem>>, vector<1x8x1xf32>
    %139 = vector.shape_cast %138 : vector<1x8x1xf32> to vector<8x1xf32>
    %140 = vector.broadcast %139 : vector<8x1xf32> to vector<8x256xf32>
    %141 = arith.addf %137, %140 : vector<8x256xf32>
    %cst_62 = arith.constant 0.000000e+00 : f32
    %142 = vector.broadcast %cst_62 : f32 to vector<8x256xf32>
    %143 = arith.cmpf oge, %141, %142 : vector<8x256xf32>
    %cst_63 = arith.constant 0.00999999977 : f32
    %144 = vector.broadcast %cst_63 : f32 to vector<8x256xf32>
    %145 = arith.mulf %144, %141 : vector<8x256xf32>
    %146 = arith.select %143, %141, %145 : vector<8x256xi1>, vector<8x256xf32>
    %c16_i32_64 = arith.constant 16 : i32
    %147 = tpu.dynamic_rotate %146 by %c16_i32_64 dim 1 : vector<8x256xf32>, i32 -> vector<8x256xf32>
    %148 = vector.broadcast %6 : vector<1x256xf32> to vector<8x256xf32>
    %149 = arith.mulf %147, %148 : vector<8x256xf32>
    %c240_i32_65 = arith.constant 240 : i32
    %150 = tpu.dynamic_rotate %146 by %c240_i32_65 dim 1 : vector<8x256xf32>, i32 -> vector<8x256xf32>
    %151 = vector.broadcast %16 : vector<1x256xf32> to vector<8x256xf32>
    %152 = arith.mulf %150, %151 : vector<8x256xf32>
    %153 = tpu.concatenate %149, %146, %152 in 0 : vector<8x256xf32>, vector<8x256xf32>, vector<8x256xf32> -> vector<24x256xf32>
    %154 = vector.extract_strided_slice %2 {offsets = [0, 512], sizes = [8, 24], strides = [1, 1]} : vector<8x1152xbf16> to vector<8x24xbf16>
    %155 = arith.truncf %153 : vector<24x256xf32> to vector<24x256xbf16>
    %cst_66 = arith.constant dense<0.000000e+00> : vector<8x256xf32>
    %156 = tpu.matmul %154, %155, %cst_66 {dimension_numbers = #tpu.dot_dimension_numbers<[1], [0], [0], [1], [0, 0, 1, 1], [], []>} : vector<8x24xbf16>, vector<24x256xbf16>, vector<8x256xf32> -> vector<8x256xf32>
    %c4_67 = arith.constant 4 : index
    %c0_68 = arith.constant 0 : index
    %c0_69 = arith.constant 0 : index
    %157 = vector.load %arg4[%c4_67, %c0_68, %c0_69] : memref<9x8x1xf32, #tpu.memory_space<vmem>>, vector<1x8x1xf32>
    %158 = vector.shape_cast %157 : vector<1x8x1xf32> to vector<8x1xf32>
    %159 = vector.broadcast %158 : vector<8x1xf32> to vector<8x256xf32>
    %160 = arith.addf %156, %159 : vector<8x256xf32>
    %cst_70 = arith.constant 0.000000e+00 : f32
    %161 = vector.broadcast %cst_70 : f32 to vector<8x256xf32>
    %162 = arith.cmpf oge, %160, %161 : vector<8x256xf32>
    %cst_71 = arith.constant 0.00999999977 : f32
    %163 = vector.broadcast %cst_71 : f32 to vector<8x256xf32>
    %164 = arith.mulf %163, %160 : vector<8x256xf32>
    %165 = arith.select %162, %160, %164 : vector<8x256xi1>, vector<8x256xf32>
    %c32_i32_72 = arith.constant 32 : i32
    %166 = tpu.dynamic_rotate %108 by %c32_i32_72 dim 1 : vector<8x256xf32>, i32 -> vector<8x256xf32>
    %167 = vector.broadcast %22 : vector<1x256xf32> to vector<8x256xf32>
    %168 = arith.mulf %166, %167 : vector<8x256xf32>
    %c16_i32_73 = arith.constant 16 : i32
    %169 = tpu.dynamic_rotate %108 by %c16_i32_73 dim 1 : vector<8x256xf32>, i32 -> vector<8x256xf32>
    %170 = vector.broadcast %6 : vector<1x256xf32> to vector<8x256xf32>
    %171 = arith.mulf %169, %170 : vector<8x256xf32>
    %c240_i32_74 = arith.constant 240 : i32
    %172 = tpu.dynamic_rotate %108 by %c240_i32_74 dim 1 : vector<8x256xf32>, i32 -> vector<8x256xf32>
    %173 = vector.broadcast %16 : vector<1x256xf32> to vector<8x256xf32>
    %174 = arith.mulf %172, %173 : vector<8x256xf32>
    %c224_i32_75 = arith.constant 224 : i32
    %175 = tpu.dynamic_rotate %108 by %c224_i32_75 dim 1 : vector<8x256xf32>, i32 -> vector<8x256xf32>
    %176 = vector.broadcast %32 : vector<1x256xf32> to vector<8x256xf32>
    %177 = arith.mulf %175, %176 : vector<8x256xf32>
    %178 = tpu.concatenate %168, %171, %108, %174, %177 in 0 : vector<8x256xf32>, vector<8x256xf32>, vector<8x256xf32>, vector<8x256xf32>, vector<8x256xf32> -> vector<40x256xf32>
    %179 = vector.extract_strided_slice %2 {offsets = [0, 640], sizes = [8, 40], strides = [1, 1]} : vector<8x1152xbf16> to vector<8x40xbf16>
    %180 = arith.truncf %178 : vector<40x256xf32> to vector<40x256xbf16>
    %cst_76 = arith.constant dense<0.000000e+00> : vector<8x256xf32>
    %181 = tpu.matmul %179, %180, %cst_76 {dimension_numbers = #tpu.dot_dimension_numbers<[1], [0], [0], [1], [0, 0, 1, 1], [], []>} : vector<8x40xbf16>, vector<40x256xbf16>, vector<8x256xf32> -> vector<8x256xf32>
    %c5_77 = arith.constant 5 : index
    %c0_78 = arith.constant 0 : index
    %c0_79 = arith.constant 0 : index
    %182 = vector.load %arg4[%c5_77, %c0_78, %c0_79] : memref<9x8x1xf32, #tpu.memory_space<vmem>>, vector<1x8x1xf32>
    %183 = vector.shape_cast %182 : vector<1x8x1xf32> to vector<8x1xf32>
    %184 = vector.broadcast %183 : vector<8x1xf32> to vector<8x256xf32>
    %185 = arith.addf %181, %184 : vector<8x256xf32>
    %cst_80 = arith.constant 0.000000e+00 : f32
    %186 = vector.broadcast %cst_80 : f32 to vector<8x256xf32>
    %187 = arith.cmpf oge, %185, %186 : vector<8x256xf32>
    %cst_81 = arith.constant 0.00999999977 : f32
    %188 = vector.broadcast %cst_81 : f32 to vector<8x256xf32>
    %189 = arith.mulf %188, %185 : vector<8x256xf32>
    %190 = arith.select %187, %185, %189 : vector<8x256xi1>, vector<8x256xf32>
    %c32_i32_82 = arith.constant 32 : i32
    %191 = tpu.dynamic_rotate %190 by %c32_i32_82 dim 1 : vector<8x256xf32>, i32 -> vector<8x256xf32>
    %192 = vector.broadcast %22 : vector<1x256xf32> to vector<8x256xf32>
    %193 = arith.mulf %191, %192 : vector<8x256xf32>
    %c16_i32_83 = arith.constant 16 : i32
    %194 = tpu.dynamic_rotate %190 by %c16_i32_83 dim 1 : vector<8x256xf32>, i32 -> vector<8x256xf32>
    %195 = vector.broadcast %6 : vector<1x256xf32> to vector<8x256xf32>
    %196 = arith.mulf %194, %195 : vector<8x256xf32>
    %c240_i32_84 = arith.constant 240 : i32
    %197 = tpu.dynamic_rotate %190 by %c240_i32_84 dim 1 : vector<8x256xf32>, i32 -> vector<8x256xf32>
    %198 = vector.broadcast %16 : vector<1x256xf32> to vector<8x256xf32>
    %199 = arith.mulf %197, %198 : vector<8x256xf32>
    %c224_i32_85 = arith.constant 224 : i32
    %200 = tpu.dynamic_rotate %190 by %c224_i32_85 dim 1 : vector<8x256xf32>, i32 -> vector<8x256xf32>
    %201 = vector.broadcast %32 : vector<1x256xf32> to vector<8x256xf32>
    %202 = arith.mulf %200, %201 : vector<8x256xf32>
    %203 = tpu.concatenate %193, %196, %190, %199, %202 in 0 : vector<8x256xf32>, vector<8x256xf32>, vector<8x256xf32>, vector<8x256xf32>, vector<8x256xf32> -> vector<40x256xf32>
    %204 = vector.extract_strided_slice %2 {offsets = [0, 768], sizes = [8, 40], strides = [1, 1]} : vector<8x1152xbf16> to vector<8x40xbf16>
    %205 = arith.truncf %203 : vector<40x256xf32> to vector<40x256xbf16>
    %cst_86 = arith.constant dense<0.000000e+00> : vector<8x256xf32>
    %206 = tpu.matmul %204, %205, %cst_86 {dimension_numbers = #tpu.dot_dimension_numbers<[1], [0], [0], [1], [0, 0, 1, 1], [], []>} : vector<8x40xbf16>, vector<40x256xbf16>, vector<8x256xf32> -> vector<8x256xf32>
    %c6_87 = arith.constant 6 : index
    %c0_88 = arith.constant 0 : index
    %c0_89 = arith.constant 0 : index
    %207 = vector.load %arg4[%c6_87, %c0_88, %c0_89] : memref<9x8x1xf32, #tpu.memory_space<vmem>>, vector<1x8x1xf32>
    %208 = vector.shape_cast %207 : vector<1x8x1xf32> to vector<8x1xf32>
    %209 = vector.broadcast %208 : vector<8x1xf32> to vector<8x256xf32>
    %210 = arith.addf %206, %209 : vector<8x256xf32>
    %cst_90 = arith.constant 0.000000e+00 : f32
    %211 = vector.broadcast %cst_90 : f32 to vector<8x256xf32>
    %212 = arith.cmpf oge, %210, %211 : vector<8x256xf32>
    %cst_91 = arith.constant 0.00999999977 : f32
    %213 = vector.broadcast %cst_91 : f32 to vector<8x256xf32>
    %214 = arith.mulf %213, %210 : vector<8x256xf32>
    %215 = arith.select %212, %210, %214 : vector<8x256xi1>, vector<8x256xf32>
    %c32_i32_92 = arith.constant 32 : i32
    %216 = tpu.dynamic_rotate %215 by %c32_i32_92 dim 1 : vector<8x256xf32>, i32 -> vector<8x256xf32>
    %217 = vector.broadcast %22 : vector<1x256xf32> to vector<8x256xf32>
    %218 = arith.mulf %216, %217 : vector<8x256xf32>
    %c16_i32_93 = arith.constant 16 : i32
    %219 = tpu.dynamic_rotate %215 by %c16_i32_93 dim 1 : vector<8x256xf32>, i32 -> vector<8x256xf32>
    %220 = vector.broadcast %6 : vector<1x256xf32> to vector<8x256xf32>
    %221 = arith.mulf %219, %220 : vector<8x256xf32>
    %c240_i32_94 = arith.constant 240 : i32
    %222 = tpu.dynamic_rotate %215 by %c240_i32_94 dim 1 : vector<8x256xf32>, i32 -> vector<8x256xf32>
    %223 = vector.broadcast %16 : vector<1x256xf32> to vector<8x256xf32>
    %224 = arith.mulf %222, %223 : vector<8x256xf32>
    %c224_i32_95 = arith.constant 224 : i32
    %225 = tpu.dynamic_rotate %215 by %c224_i32_95 dim 1 : vector<8x256xf32>, i32 -> vector<8x256xf32>
    %226 = vector.broadcast %32 : vector<1x256xf32> to vector<8x256xf32>
    %227 = arith.mulf %225, %226 : vector<8x256xf32>
    %228 = tpu.concatenate %218, %221, %215, %224, %227 in 0 : vector<8x256xf32>, vector<8x256xf32>, vector<8x256xf32>, vector<8x256xf32>, vector<8x256xf32> -> vector<40x256xf32>
    %229 = vector.extract_strided_slice %2 {offsets = [0, 896], sizes = [8, 40], strides = [1, 1]} : vector<8x1152xbf16> to vector<8x40xbf16>
    %230 = arith.truncf %228 : vector<40x256xf32> to vector<40x256xbf16>
    %cst_96 = arith.constant dense<0.000000e+00> : vector<8x256xf32>
    %231 = tpu.matmul %229, %230, %cst_96 {dimension_numbers = #tpu.dot_dimension_numbers<[1], [0], [0], [1], [0, 0, 1, 1], [], []>} : vector<8x40xbf16>, vector<40x256xbf16>, vector<8x256xf32> -> vector<8x256xf32>
    %c7_97 = arith.constant 7 : index
    %c0_98 = arith.constant 0 : index
    %c0_99 = arith.constant 0 : index
    %232 = vector.load %arg4[%c7_97, %c0_98, %c0_99] : memref<9x8x1xf32, #tpu.memory_space<vmem>>, vector<1x8x1xf32>
    %233 = vector.shape_cast %232 : vector<1x8x1xf32> to vector<8x1xf32>
    %234 = vector.broadcast %233 : vector<8x1xf32> to vector<8x256xf32>
    %235 = arith.addf %231, %234 : vector<8x256xf32>
    %cst_100 = arith.constant 0.000000e+00 : f32
    %236 = vector.broadcast %cst_100 : f32 to vector<8x256xf32>
    %237 = arith.cmpf oge, %235, %236 : vector<8x256xf32>
    %cst_101 = arith.constant 0.00999999977 : f32
    %238 = vector.broadcast %cst_101 : f32 to vector<8x256xf32>
    %239 = arith.mulf %238, %235 : vector<8x256xf32>
    %240 = arith.select %237, %235, %239 : vector<8x256xi1>, vector<8x256xf32>
    %241 = vector.extract_strided_slice %2 {offsets = [0, 1024], sizes = [8, 8], strides = [1, 1]} : vector<8x1152xbf16> to vector<8x8xbf16>
    %242 = arith.truncf %108 : vector<8x256xf32> to vector<8x256xbf16>
    %cst_102 = arith.constant dense<0.000000e+00> : vector<8x256xf32>
    %243 = tpu.matmul %241, %242, %cst_102 {dimension_numbers = #tpu.dot_dimension_numbers<[1], [0], [0], [1], [0, 0, 1, 1], [], []>} : vector<8x8xbf16>, vector<8x256xbf16>, vector<8x256xf32> -> vector<8x256xf32>
    %c8_103 = arith.constant 8 : index
    %c0_104 = arith.constant 0 : index
    %c0_105 = arith.constant 0 : index
    %244 = vector.load %arg4[%c8_103, %c0_104, %c0_105] : memref<9x8x1xf32, #tpu.memory_space<vmem>>, vector<1x8x1xf32>
    %245 = vector.shape_cast %244 : vector<1x8x1xf32> to vector<8x1xf32>
    %246 = vector.broadcast %245 : vector<8x1xf32> to vector<8x256xf32>
    %247 = arith.addf %243, %246 : vector<8x256xf32>
    %cst_106 = arith.constant 0.000000e+00 : f32
    %248 = vector.broadcast %cst_106 : f32 to vector<8x256xf32>
    %249 = arith.cmpf oge, %247, %248 : vector<8x256xf32>
    %cst_107 = arith.constant 0.00999999977 : f32
    %250 = vector.broadcast %cst_107 : f32 to vector<8x256xf32>
    %251 = arith.mulf %250, %247 : vector<8x256xf32>
    %252 = arith.select %249, %247, %251 : vector<8x256xi1>, vector<8x256xf32>
    %253 = arith.addf %165, %240 : vector<8x256xf32>
    %254 = vector.extract_strided_slice %253 {offsets = [0, 0], sizes = [4, 256], strides = [1, 1]} : vector<8x256xf32> to vector<4x256xf32>
    %255 = vector.extract_strided_slice %252 {offsets = [0, 0], sizes = [4, 256], strides = [1, 1]} : vector<8x256xf32> to vector<4x256xf32>
    %cst_108 = arith.constant dense<0xFF800000> : vector<256xf32>
    %256 = vector.multi_reduction <maximumf>, %254, %cst_108 [0] : vector<4x256xf32> to vector<256xf32>
    %257 = vector.shape_cast %256 : vector<256xf32> to vector<1x256xf32>
    %258 = vector.broadcast %257 : vector<1x256xf32> to vector<4x256xf32>
    %259 = arith.subf %254, %258 : vector<4x256xf32>
    %260 = math.exp %259 : vector<4x256xf32>
    %cst_109 = arith.constant dense<0.000000e+00> : vector<256xf32>
    %261 = vector.multi_reduction <add>, %260, %cst_109 [0] : vector<4x256xf32> to vector<256xf32>
    %262 = vector.shape_cast %261 : vector<256xf32> to vector<1x256xf32>
    %263 = tpu.reciprocal %262 {approx = true} : vector<1x256xf32> -> vector<1x256xf32>
    %264 = vector.broadcast %263 : vector<1x256xf32> to vector<4x256xf32>
    %265 = arith.mulf %260, %264 : vector<4x256xf32>
    %266 = arith.mulf %265, %255 : vector<4x256xf32>
    %c0_110 = arith.constant 0 : index
    %c0_111 = arith.constant 0 : index
    %c0_112 = arith.constant 0 : index
    %267 = vector.load %arg5[%c0_110, %c0_111, %c0_112] : memref<1x4x256xf32, #tpu.memory_space<vmem>>, vector<1x4x256xf32>
    %268 = vector.shape_cast %267 : vector<1x4x256xf32> to vector<4x256xf32>
    %269 = vector.shape_cast %266 : vector<4x256xf32> to vector<1x4x256xf32>
    tpu.vector_store %arg5[%c0_110, %c0_111, %c0_112], %269 {strides = array<i32>} : memref<1x4x256xf32, #tpu.memory_space<vmem>>, vector<1x4x256xf32>,
    return
  }
  func.func @transform_0(%arg0: i32) -> (i32, i32, i32) {
    %c0_i32 = arith.constant 0 : i32
    %c0_i32_0 = arith.constant 0 : i32
    %c0_i32_1 = arith.constant 0 : i32
    return %arg0, %c0_i32, %c0_i32_0 : i32, i32, i32
  }
  func.func @transform_1(%arg0: i32) -> (i32, i32, i32) {
    %c0_i32 = arith.constant 0 : i32
    %c0_i32_0 = arith.constant 0 : i32
    %c0_i32_1 = arith.constant 0 : i32
    %c0_i32_2 = arith.constant 0 : i32
    return %c0_i32, %c0_i32_0, %c0_i32_1 : i32, i32, i32
  }
  func.func @transform_2(%arg0: i32) -> (i32, i32) {
    %c0_i32 = arith.constant 0 : i32
    %c0_i32_0 = arith.constant 0 : i32
    %c0_i32_1 = arith.constant 0 : i32
    return %c0_i32, %c0_i32_0 : i32, i32
  }
  func.func @transform_3(%arg0: i32) -> (i32, i32, i32) {
    %c0_i32 = arith.constant 0 : i32
    %c0_i32_0 = arith.constant 0 : i32
    %c0_i32_1 = arith.constant 0 : i32
    %c0_i32_2 = arith.constant 0 : i32
    return %c0_i32, %c0_i32_0, %c0_i32_1 : i32, i32, i32
  }
  func.func @transform_4(%arg0: i32) -> (i32, i32, i32) {
    %c0_i32 = arith.constant 0 : i32
    %c0_i32_0 = arith.constant 0 : i32
    %c0_i32_1 = arith.constant 0 : i32
    return %arg0, %c0_i32, %c0_i32_0 : i32, i32, i32
  }
}

</mosaic_0001>

<bundles_post_ra>
// kernel: msab_forward.1
= control target key start
LH: loop header
LB: loop body
LE: loop exit
PB: predicated region body
PF: predicated region fallthrough
CT: control target
= control target key end

     0   :  { %s1334_s15 = smov 0   ;;  %s1787_s0 = inlined_call_operand.vmem [shape: f32[2,8,256], index: 0, kind: input, shape index: {}]   ;;  %s1788_s1 = inlined_call_operand.vmem [shape: f32[16,1,256], index: 1, kind: input, shape index: {}]   ;;  %s1789_s2 = inlined_call_operand.vmem [shape: bf16[8,1152], index: 2, kind: input, shape index: {}]   ;;  %s1790_s3 = inlined_call_operand.vmem [shape: f32[9,8,1], index: 3, kind: input, shape index: {}]   ;;  %s1791_s4 = inlined_call_operand.vmem [shape: f32[2,4,256], index: 4, kind: output, shape index: {}]  }
   0x1 LB: > { %s1194_s16 = sadd.s32 4294967295, %s1290_s15   ;;  %p1198_p0 = scmp.ge.s32.totalorder %s1290_s15, 1  ;;  %s1290_s15 = sphi %s1334_s15, %s14_s15  }
   0x2   : > { %p162_p1 = scmp.lt.s32.totalorder %s1290_s15, 3 }
   0x4   : > { %p163_p2 = pnand %p1198_p0, %p162_p1 }
   0x5   : > { %p188_p3 = scmp.lt.s32.totalorder (!%p163_p2), %s1194_s16, 1  ;;  %s1292_s21 = smov (!%p163_p2), 113  }
   0x6   : > { %166 = sbr.rel (%p163_p2) target bundleno = 1752 (0x6d8), region = 36  ;;  %s1293_s22 = smov (!%p163_p2), 111  }
   0x7   : > { %s1294_s23 = smov (!%p163_p2), 112   ;;  %s1295_s24 = smov (!%p163_p2), 127  }
   0x8   : > { %s1296_s25 = smov (!%p163_p2), 15   ;;  %s1297_s26 = smov (!%p163_p2), 1  }
   0x9   : > { %s1298_s27 = smov (!%p163_p2), 17   ;;  %s1299_s28 = smov (!%p163_p2), 16  }
   0xa   : > { %s1303_s29 = smov (!%p163_p2), 96   ;;  %s1304_s30 = smov (!%p163_p2), 30  }
   0xb   : > { %s1793_s16 = smov (!%p188_p3, %s1194_s16), 1  ;;  %v241_v3 = vlaneseq  ;;  %v1209_v8 = vld [vmem:[%s1788_s1 + $0xe] sm:$0x3]  ;;  %v1208_v9 = vld [vmem:[%s1788_s1 + $0xc] sm:$0x3]  ;;  %vm371_vm3 = vcmask 1043456  }
   0xc   : > { %s1246_s17 = sshll.u32 %s1793_s16, 4  ;;  %v1207_v10 = vld [vmem:[%s1788_s1 + $0xa] sm:$0x3]  ;;  %v345_v11 = vperm.slane %v1209_v8, 0  ;;  %v346_v12 = vperm.slane %v1209_v8, 1  ;;  %v1386_v13 = vperm.slane %v1208_v9, 0 }
   0xd   : > { %s192_s20 = scalar_lea.vmem %s1787_s0, %s1246_s17  ;;  %v1372_v6 = vand.u32 127, %v241_v3  ;;  %v1388_v14 = vperm.slane %v1208_v9, 1  ;;  %v317_v15 = vperm.slane %v1207_v10, 0  ;;  %v318_v16 = vperm.slane %v1207_v10, 1  ;;  %v1206_v27 = vld [vmem:[%s1788_s1 + $0x8] sm:$0x3] }
   0xe   : > { %v1348_v0 = vld [vmem:[%s192_s20] sm:$0xff]  ;;  %v1354_v1 = vld [vmem:[%s192_s20 + $0x8] sm:$0xff]  ;;  %v303_v37 = vperm.slane %v1206_v27, 0  ;;  %v304_v38 = vperm.slane %v1206_v27, 1  ;;  %v1300_v49 = vmov 0   ;;  %vm367_vm9 = vcmask 588800  }
   0xf   : > { %309 = vrot.lane.b32.xlu1 %v1348_v0, %s1292_s21  ;;  %337 = vrot.lane.b32.xlu0 %v1348_v0, %s1293_s22  ;;  %vm327_vm0 = vcmp.lt.s32.totalorder %v1372_v6, 112  ;;  %vm313_vm1 = vcmp.lt.s32.totalorder %v1372_v6, 113  ;;  %vm341_vm2 = vcmp.lt.s32.totalorder %v1372_v6, 111  ;;  %vm299_vm4 = vcmp.lt.s32.totalorder %v1372_v6, 127  ;;  %v361_v45 = vld [vmem:[%s1790_s3] sm:$0xff]  ;;  %s1305_s5 = smov 126  }
  0x10   : > { %323 = vrot.lane.b32.xlu2 %v1348_v0, %s1294_s23  ;;  %v1205_v48 = vld [vmem:[%s1788_s1 + $0x6] sm:$0x3]  ;;  %1273 = vset.pattern.permute.xlu1 %v1300_v49  ;;  %v1204_v50 = vld [vmem:[%s1788_s1 + $0x4] sm:$0x3]  ;;  %vm285_vm5 = vcmp.lt.s32.totalorder %v1372_v6, 1  ;;  %vm271_vm6 = vcmp.lt.s32.totalorder %v1372_v6, 15 }
  0x11   : > { %1274 = vset.pattern.permute.xlu0 %v1300_v49  ;;  %1275 = vset.pattern.permute.xlu2 %v1300_v49  ;;  %v289_v53 = vperm.slane %v1205_v48, 0  ;;  %v290_v55 = vperm.slane %v1205_v48, 1  ;;  %v275_v56 = vperm.slane %v1204_v50, 0  ;;  %v276_v57 = vperm.slane %v1204_v50, 1  ;;  %v206_v8 = vld [vmem:[%s1788_s1] sm:$0x3] }
  0x12   : > { %v1203_v9 = vld [vmem:[%s1788_s1 + $0x2] sm:$0x3]  ;;  %vm243_vm7 = vcmp.lt.s32.totalorder %v1372_v6, 17  ;;  %vm257_vm8 = vcmp.lt.s32.totalorder %v1372_v6, 16  ;;  %s1306_s6 = smov 2   ;;  %s1307_s7 = smov 32  }
  0x13   : > { %s1308_s8 = smov 34   ;;  %vm512_vm12 = vcmp.lt.s32.totalorder %v1372_v6, 94  ;;  %vm484_vm13 = vcmp.lt.s32.totalorder %v1372_v6, 98  ;;  %vm498_vm14 = vcmp.lt.s32.totalorder %v1372_v6, 96  ;;  %vm470_vm15 = vcmp.lt.s32.totalorder %v1372_v6, 126 }
  0x17   : > { %311 = vrot.lane.b32.xlu1 %v1354_v1, %s1292_s21  ;;  %339 = vrot.lane.b32.xlu0 %v1354_v1, %s1293_s22 }
  0x18   : > { %325 = vrot.lane.b32.xlu2 %v1354_v1, %s1294_s23 }
  0x1f   : > { %297 = vrot.lane.b32.xlu1 %v1354_v1, %s1295_s24  ;;  %295 = vrot.lane.b32.xlu0 %v1348_v0, %s1295_s24 }
  0x20   : > { %267 = vrot.lane.b32.xlu2 %v1348_v0, %s1296_s25 }
  0x27   : > { %281 = vrot.lane.b32.xlu1 %v1348_v0, %s1297_s26  ;;  %269 = vrot.lane.b32.xlu0 %v1354_v1, %s1296_s25 }
  0x28   : > { %283 = vrot.lane.b32.xlu2 %v1354_v1, %s1297_s26  ;;  %s1301_s26 = smov 98  }
  0x2f   : > { %239 = vrot.lane.b32.xlu1 %v1354_v1, %s1298_s27  ;;  %237 = vrot.lane.b32.xlu0 %v1348_v0, %s1298_s27  ;;  %s1302_s27 = smov 94  }
  0x30   : > { %253 = vrot.lane.b32.xlu2 %v1348_v0, %s1299_s28 }
  0x37   : > { %255 = vrot.lane.b32.xlu0 %v1354_v1, %s1299_s28  ;;  %364 = vperm.xlu1 %1273, %v361_v45  }
  0x6a   : > { %v324_v2 = vpop.permute.xlu2 %323 }
  0x72   : > { %v326_v7 = vpop.permute.xlu2 %325 }
  0x73   : > { %v328_v19 = vsel %vm327_vm0, %v324_v2, %v326_v7  ;;  %v329_v23 = vsel %vm327_vm0, %v326_v7, %v324_v2 }
  0x74   : > { %v335_v28 = vmul.f32 %v1386_v13, %v328_v19  ;;  %v336_v33 = vmul.f32 %v1388_v14, %v329_v23 }
  0x7a   : > { %v268_v32 = vpop.permute.xlu2 %267 }
  0x81   : > { %v310_v4 = vpop.permute.xlu1 %309  ;;  %v338_v5 = vpop.permute.xlu0 %337 }
  0x82   : > { %v284_v54 = vpop.permute.xlu2 %283 }
  0x89   : > { %v312_v17 = vpop.permute.xlu1 %311  ;;  %v340_v18 = vpop.permute.xlu0 %339 }
  0x8a   : > { %v314_v20 = vsel %vm313_vm1, %v310_v4, %v312_v17  ;;  %v342_v21 = vsel %vm341_vm2, %v338_v5, %v340_v18  ;;  %v343_v22 = vsel %vm341_vm2, %v340_v18, %v338_v5  ;;  %v315_v24 = vsel %vm313_vm1, %v312_v17, %v310_v4 }
  0x8b   : > { %v349_v25 = vmul.f32 %v345_v11, %v342_v21  ;;  %v350_v26 = vmul.f32 %v346_v12, %v343_v22  ;;  %v321_v29 = vmul.f32 %v317_v15, %v314_v20  ;;  %v322_v34 = vmul.f32 %v318_v16, %v315_v24  ;;  %v254_v15 = vpop.permute.xlu2 %253 }
  0x8c   : > { %v247_v11 = vperm.slane %v206_v8, 0  ;;  %v248_v12 = vperm.slane %v206_v8, 1  ;;  %v1423_v16 = vperm.slane %v1203_v9, 0  ;;  %v1425_v17 = vperm.slane %v1203_v9, 1 }
  0x8d   : > { %v359_v30 = vpack.c.bf16 %v349_v25, %v349_v25  ;;  %v360_v31 = vpack.c.bf16 %v350_v26, %v350_v26  ;;  %v357_v41 = vpack.c.bf16 %v335_v28, %v321_v29  ;;  %v358_v44 = vpack.c.bf16 %v336_v33, %v322_v34  ;;  %v1436_v29 = vld [vmem:[%s1789_s2] sm:$0xff] }
  0x8e   : > { %vm442_vm1 = vcmp.lt.s32.totalorder %v1372_v6, 30  ;;  %vm456_vm2 = vcmp.lt.s32.totalorder %v1372_v6, 2 }
  0x8f   : > { %v373_v35 = vsel %vm371_vm3, %v359_v30, 0  ;;  %v376_v36 = vsel %vm371_vm3, %v360_v31, 0 }
  0x90   : > { %381 = vmatpush.bf16.msra.mxu0 %v373_v35  ;;  %394 = vmatpush.bf16.msra.mxu1 %v376_v36 }
  0x91   : > { %v298_v39 = vpop.permute.xlu1 %297  ;;  %v296_v40 = vpop.permute.xlu0 %295 }
  0x92   : > { %v300_v42 = vsel %vm299_vm4, %v296_v40, %v298_v39  ;;  %v301_v43 = vsel %vm299_vm4, %v298_v39, %v296_v40  ;;  %vm428_vm4 = vcmp.lt.s32.totalorder %v1372_v6, 32 }
  0x93   : > { %v307_v46 = vmul.f32 %v303_v37, %v300_v42  ;;  %v308_v47 = vmul.f32 %v304_v38, %v301_v43  ;;  %v1217_v43 = vld [vmem:[%s1788_s1 + $0x1e] sm:$0x3] }
  0x94   : > { %382 = vmatpush.bf16.msra.mxu0 %v357_v41  ;;  %395 = vmatpush.bf16.msra.mxu1 %v358_v44  ;;  %v516_v44 = vperm.slane %v1217_v43, 0  ;;  %v517_v45 = vperm.slane %v1217_v43, 1 }
  0x95   : > { %v355_v51 = vpack.c.bf16 %v307_v46, %v1348_v0  ;;  %v356_v52 = vpack.c.bf16 %v308_v47, %v1354_v1 }
  0x98   : > { %383 = vmatpush.bf16.msra.mxu0 %v355_v51  ;;  %396 = vmatpush.bf16.msra.mxu1 %v356_v52  ;;  %v1215_v51 = vld [vmem:[%s1788_s1 + $0x1a] sm:$0x3] }
  0x99   : > { %v282_v58 = vpop.permute.xlu1 %281  ;;  %v270_v59 = vpop.permute.xlu0 %269 }
  0x9a   : > { %v286_v60 = vsel %vm285_vm5, %v282_v58, %v284_v54  ;;  %v287_v61 = vsel %vm285_vm5, %v284_v54, %v282_v58  ;;  %v272_v62 = vsel %vm271_vm6, %v268_v32, %v270_v59  ;;  %v273_v63 = vsel %vm271_vm6, %v270_v59, %v268_v32  ;;  %v1216_v54 = vld [vmem:[%s1788_s1 + $0x1c] sm:$0x3] }
  0x9b   : > { %v293_v0 = vmul.f32 %v289_v53, %v287_v61  ;;  %v294_v1 = vmul.f32 %v290_v55, %v286_v60  ;;  %v279_v2 = vmul.f32 %v275_v56, %v273_v63  ;;  %v280_v3 = vmul.f32 %v276_v57, %v272_v62 }
  0x9c   : > { %v488_v57 = vperm.slane %v1215_v51, 0  ;;  %v489_v58 = vperm.slane %v1215_v51, 1  ;;  %v1480_v61 = vperm.slane %v1216_v54, 0  ;;  %v1482_v62 = vperm.slane %v1216_v54, 1 }
  0x9d   : > { %v353_v4 = vpack.c.bf16 %v293_v0, %v279_v2  ;;  %v354_v5 = vpack.c.bf16 %v294_v1, %v280_v3  ;;  %vm414_vm5 = vcmp.lt.s32.totalorder %v1372_v6, 34 }
  0x9f   : > { %384 = vmatpush.bf16.msra.mxu0 %v353_v4  ;;  %397 = vmatpush.bf16.msra.mxu1 %v354_v5  ;;  %v1220_v5 = vld [vmem:[%s1790_s3 + $0x8] sm:$0xff] }
  0xa1   : > { %v238_v7 = vpop.permute.xlu0 %237  ;;  %v240_v10 = vpop.permute.xlu1 %239 }
  0xa2   : > { %v244_v18 = vsel %vm243_vm7, %v238_v7, %v240_v10  ;;  %v245_v19 = vsel %vm243_vm7, %v240_v10, %v238_v7 }
  0xa3   : > { %v251_v23 = vmul.f32 %v247_v11, %v245_v19  ;;  %v252_v24 = vmul.f32 %v248_v12, %v244_v18  ;;  %v1214_v12 = vld [vmem:[%s1788_s1 + $0x18] sm:$0x3] }
  0xa4   : > { %v474_v19 = vperm.slane %v1214_v12, 0 }
  0xa9   : > { %v256_v20 = vpop.permute.xlu0 %255  ;;  %v365_v30 = vpop.permute.xlu1 %364 }
  0xaa   : > { %v258_v21 = vsel %vm257_vm8, %v254_v15, %v256_v20  ;;  %v259_v22 = vsel %vm257_vm8, %v256_v20, %v254_v15  ;;  %v475_v20 = vperm.slane %v1214_v12, 1 }
  0xab   : > { %v265_v25 = vmul.f32 %v1423_v16, %v259_v22  ;;  %v266_v26 = vmul.f32 %v1425_v17, %v258_v21  ;;  %v1223_v22 = vld [vmem:[%s1790_s3 + $0x10] sm:$0xff] }
  0xad   : > { %v351_v27 = vpack.c.bf16 %v265_v25, %v251_v23  ;;  %v352_v28 = vpack.c.bf16 %v266_v26, %v252_v24  ;;  %v1212_v26 = vld [vmem:[%s1788_s1 + $0x14] sm:$0x3] }
  0xaf   : > { %385 = vmatpush.bf16.msra.mxu0 %v351_v27  ;;  %398 = vmatpush.bf16.msra.mxu1 %v352_v28 }
  0xb2   : > { %1218 = vmatmul.msk.bf16.vlgmr.msra.gmra.mxu0 %vm367_vm9, %v1436_v29  ;;  %1219 = vmatmul.msk.bf16.vlgmr.msra.gmra.mxu1 %vm367_vm9, %v1436_v29 }
 0x12f   : > { %v387_v31 = vpop.f32.mrf.mxu0  ;;  %v400_v32 = vpop.f32.mrf.mxu1 }
 0x130   : > { %v388_v33 = vadd.f32 %v387_v31, %v365_v30  ;;  %v401_v34 = vadd.f32 %v400_v32, %v365_v30  ;;  %v1213_v30 = vld [vmem:[%s1788_s1 + $0x16] sm:$0x3] }
 0x132   : > { %vm404_vm10 = vcmp.ge.f32.partialorder %v388_v33, 0.0  ;;  %v406_v35 = vmul.f32 0.01, %v388_v33  ;;  %vm405_vm11 = vcmp.ge.f32.partialorder %v401_v34, 0.0  ;;  %v407_v36 = vmul.f32 0.01, %v401_v34 }
 0x134   : > { %v1442_v37 = vsel %vm404_vm10, %v388_v33, %v406_v35  ;;  %v1444_v38 = vsel %vm405_vm11, %v401_v34, %v407_v36  ;;  %v446_v34 = vperm.slane %v1212_v26, 0  ;;  %v447_v35 = vperm.slane %v1212_v26, 1 }
 0x135   : > { %480 = vrot.lane.b32.xlu1 %v1442_v37, %s1301_s26  ;;  %508 = vrot.lane.b32.xlu2 %v1442_v37, %s1302_s27  ;;  %v460_v36 = vperm.slane %v1213_v30, 0 }
 0x136   : > { %510 = vrot.lane.b32.xlu0 %v1444_v38, %s1302_s27 }
 0x137   : > { %v389_v39 = vpop.f32.mrf.mxu0  ;;  %v402_v40 = vpop.f32.mrf.mxu1 }
 0x138   : > { %v461_v39 = vperm.slane %v1213_v30, 1 }
 0x13d   : > { %496 = vrot.lane.b32.xlu1 %v1444_v38, %s1303_s29  ;;  %482 = vrot.lane.b32.xlu2 %v1444_v38, %s1301_s26 }
 0x13e   : > { %494 = vrot.lane.b32.xlu0 %v1442_v37, %s1303_s29 }
 0x145   : > { %438 = vrot.lane.b32.xlu1 %v1442_v37, %s1304_s30  ;;  %466 = vrot.lane.b32.xlu2 %v1442_v37, %s1305_s5 }
 0x146   : > { %468 = vrot.lane.b32.xlu0 %v1444_v38, %s1305_s5 }
 0x14d   : > { %454 = vrot.lane.b32.xlu1 %v1444_v38, %s1306_s6  ;;  %440 = vrot.lane.b32.xlu2 %v1444_v38, %s1304_s30 }
 0x14e   : > { %452 = vrot.lane.b32.xlu0 %v1442_v37, %s1306_s6 }
 0x155   : > { %424 = vrot.lane.b32.xlu1 %v1442_v37, %s1307_s7  ;;  %410 = vrot.lane.b32.xlu2 %v1442_v37, %s1308_s8 }
 0x156   : > { %412 = vrot.lane.b32.xlu0 %v1444_v38, %s1308_s8 }
 0x15d   : > { %426 = vrot.lane.b32.xlu2 %v1444_v38, %s1307_s7 }
 0x15e   : > { %536 = vperm.xlu0 %1274, %v1220_v5  }
 0x166   : > { %607 = vperm.xlu0 %1274, %v1223_v22  }
 0x18f   : > { %v509_v41 = vpop.permute.xlu2 %508 }
 0x197   : > { %v483_v42 = vpop.permute.xlu2 %482 }
 0x19f   : > { %v467_v48 = vpop.permute.xlu2 %466 }
 0x1a7   : > { %v481_v46 = vpop.permute.xlu1 %480  ;;  %v441_v11 = vpop.permute.xlu2 %440 }
 0x1a8   : > { %v511_v47 = vpop.permute.xlu0 %510  ;;  %v485_v63 = vsel %vm484_vm13, %v481_v46, %v483_v42  ;;  %v486_v0 = vsel %vm484_vm13, %v483_v42, %v481_v46 }
 0x1a9   : > { %v513_v49 = vsel %vm512_vm12, %v509_v41, %v511_v47  ;;  %v514_v50 = vsel %vm512_vm12, %v511_v47, %v509_v41  ;;  %v492_v7 = vmul.f32 %v488_v57, %v485_v63  ;;  %v493_v8 = vmul.f32 %v489_v58, %v486_v0 }
 0x1aa   : > { %v520_v52 = vmul.f32 %v516_v44, %v513_v49  ;;  %v521_v53 = vmul.f32 %v517_v45, %v514_v50  ;;  %v1210_v49 = vld [vmem:[%s1788_s1 + $0x10] sm:$0x3]  ;;  %v540_v58 = vunpack.c.h.b16 %v1436_v29  ;;  %vm823_vm12 = vcmask 326656  }
 0x1ab   : > { %v418_v54 = vperm.slane %v1210_v49, 0 }
 0x1ac   : > { %v530_v55 = vpack.c.bf16 %v520_v52, %v520_v52  ;;  %v531_v56 = vpack.c.bf16 %v521_v53, %v521_v53 }
 0x1ae   : > { %v546_v59 = vsel %vm371_vm3, %v530_v55, 0  ;;  %v549_v60 = vsel %vm371_vm3, %v531_v56, 0  ;;  %v419_v55 = vperm.slane %v1210_v49, 1 }
 0x1af   : > { %554 = vmatpush.bf16.msra.mxu2 %v546_v59  ;;  %567 = vmatpush.bf16.msra.mxu3 %v549_v60  ;;  %v497_v1 = vpop.permute.xlu1 %496  ;;  %v411_v33 = vpop.permute.xlu2 %410 }
 0x1b0   : > { %v495_v2 = vpop.permute.xlu0 %494 }
 0x1b1   : > { %v499_v3 = vsel %vm498_vm14, %v495_v2, %v497_v1  ;;  %v500_v4 = vsel %vm498_vm14, %v497_v1, %v495_v2 }
 0x1b2   : > { %v506_v9 = vmul.f32 %v1480_v61, %v499_v3  ;;  %v507_v10 = vmul.f32 %v1482_v62, %v500_v4 }
 0x1b4   : > { %v528_v15 = vpack.c.bf16 %v506_v9, %v492_v7  ;;  %v529_v18 = vpack.c.bf16 %v507_v10, %v493_v8  ;;  %v541_v9 = vpack.c.b16 %v540_v58, %v540_v58  ;;  %v1232_v58 = vld [vmem:[%s1790_s3 + $0x28] sm:$0xff] }
 0x1b6   : > { %555 = vmatpush.bf16.msra.mxu2 %v528_v15  ;;  %568 = vmatpush.bf16.msra.mxu3 %v529_v18 }
 0x1b7   : > { %v439_v21 = vpop.permute.xlu1 %438  ;;  %v427_v56 = vpop.permute.xlu2 %426 }
 0x1b8   : > { %v469_v23 = vpop.permute.xlu0 %468  ;;  %v443_v40 = vsel %vm442_vm1, %v439_v21, %v441_v11  ;;  %v444_v41 = vsel %vm442_vm1, %v441_v11, %v439_v21 }
 0x1b9   : > { %v471_v24 = vsel %vm470_vm15, %v467_v48, %v469_v23  ;;  %v472_v25 = vsel %vm470_vm15, %v469_v23, %v467_v48  ;;  %v450_v46 = vmul.f32 %v446_v34, %v444_v41  ;;  %v451_v47 = vmul.f32 %v447_v35, %v443_v40 }
 0x1ba   : > { %v478_v27 = vmul.f32 %v474_v19, %v471_v24  ;;  %v479_v28 = vmul.f32 %v475_v20, %v472_v25 }
 0x1bc   : > { %v526_v31 = vpack.c.bf16 %v478_v27, %v1442_v37  ;;  %v527_v32 = vpack.c.bf16 %v479_v28, %v1444_v38  ;;  %v1211_v38 = vld [vmem:[%s1788_s1 + $0x12] sm:$0x3] }
 0x1bd   : > { %v1517_v52 = vperm.slane %v1211_v38, 0  ;;  %v1519_v53 = vperm.slane %v1211_v38, 1 }
 0x1be   : > { %556 = vmatpush.bf16.msra.mxu2 %v526_v31  ;;  %569 = vmatpush.bf16.msra.mxu3 %v527_v32 }
 0x1bf   : > { %v455_v42 = vpop.permute.xlu1 %454 }
 0x1c0   : > { %v453_v43 = vpop.permute.xlu0 %452 }
 0x1c1   : > { %v457_v44 = vsel %vm456_vm2, %v453_v43, %v455_v42  ;;  %v458_v45 = vsel %vm456_vm2, %v455_v42, %v453_v43 }
 0x1c2   : > { %v464_v37 = vmul.f32 %v460_v36, %v458_v45  ;;  %v465_v48 = vmul.f32 %v461_v39, %v457_v44  ;;  %v202_v45 = vld [vmem:[%s1789_s2 + $0x8] sm:$0xff] }
 0x1c4   : > { %v524_v50 = vpack.c.bf16 %v464_v37, %v450_v46  ;;  %v525_v51 = vpack.c.bf16 %v465_v48, %v451_v47 }
 0x1c6   : > { %557 = vmatpush.bf16.msra.mxu2 %v524_v50  ;;  %570 = vmatpush.bf16.msra.mxu3 %v525_v51 }
 0x1c7   : > { %v425_v57 = vpop.permute.xlu1 %424 }
 0x1c8   : > { %v429_v59 = vsel %vm428_vm4, %v425_v57, %v427_v56  ;;  %v430_v60 = vsel %vm428_vm4, %v427_v56, %v425_v57  ;;  %v413_v63 = vpop.permute.xlu0 %412  ;;  %v1226_v57 = vld [vmem:[%s1790_s3 + $0x18] sm:$0xff] }
 0x1c9   : > { %v436_v0 = vmul.f32 %v1517_v52, %v430_v60  ;;  %v437_v1 = vmul.f32 %v1519_v53, %v429_v59  ;;  %v415_v2 = vsel %vm414_vm5, %v411_v33, %v413_v63  ;;  %v416_v3 = vsel %vm414_vm5, %v413_v63, %v411_v33 }
 0x1ca   : > { %v422_v4 = vmul.f32 %v418_v54, %v416_v3  ;;  %v423_v5 = vmul.f32 %v419_v55, %v415_v2  ;;  %vm1049_vm5 = vcmask 64512  }
 0x1cc   : > { %v522_v7 = vpack.c.bf16 %v436_v0, %v422_v4  ;;  %v523_v8 = vpack.c.bf16 %v437_v1, %v423_v5 }
 0x1ce   : > { %558 = vmatpush.bf16.msra.mxu2 %v522_v7  ;;  %571 = vmatpush.bf16.msra.mxu3 %v523_v8 }
 0x1d0   : > { %v537_v29 = vpop.permute.xlu0 %536 }
 0x1d1   : > { %1221 = vmatmul.msk.bf16.vlgmr.msra.gmra.mxu2 %vm367_vm9, %v541_v9  ;;  %1222 = vmatmul.msk.bf16.vlgmr.msra.gmra.mxu3 %vm367_vm9, %v541_v9  ;;  %vm610_vm9 = vcmask 195584  }
 0x1d8   : > { %v608_v46 = vpop.permute.xlu0 %607 }
 0x254   : > { %v560_v10 = vpop.f32.mrf.mxu2  ;;  %v573_v11 = vpop.f32.mrf.mxu3 }
 0x255   : > { %v561_v12 = vadd.f32 %v560_v10, %v537_v29  ;;  %v574_v15 = vadd.f32 %v573_v11, %v537_v29  ;;  %v680_v10 = vunpack.c.h.b16 %v202_v45 }
 0x257   : > { %vm577_vm6 = vcmp.ge.f32.partialorder %v561_v12, 0.0  ;;  %v579_v18 = vmul.f32 0.01, %v561_v12  ;;  %vm578_vm7 = vcmp.ge.f32.partialorder %v574_v15, 0.0  ;;  %v580_v19 = vmul.f32 0.01, %v574_v15 }
 0x259   : > { %v1531_v20 = vsel %vm577_vm6, %v561_v12, %v579_v18  ;;  %v1533_v21 = vsel %vm578_vm7, %v574_v15, %v580_v19 }
 0x25a   : > { %593 = vrot.lane.b32.xlu2 %v1533_v21, %s1294_s23  ;;  %591 = vrot.lane.b32.xlu1 %v1531_v20, %s1294_s23 }
 0x25c   : > { %v562_v22 = vpop.f32.mrf.mxu2  ;;  %v575_v23 = vpop.f32.mrf.mxu3 }
 0x262   : > { %585 = vrot.lane.b32.xlu2 %v1533_v21, %s1299_s28  ;;  %583 = vrot.lane.b32.xlu1 %v1531_v20, %s1299_s28 }
 0x2b4   : > { %v594_v24 = vpop.permute.xlu2 %593 }
 0x2bc   : > { %v586_v35 = vpop.permute.xlu2 %585 }
 0x2cc   : > { %v592_v25 = vpop.permute.xlu1 %591 }
 0x2cd   : > { %v595_v26 = vsel %vm327_vm0, %v592_v25, %v594_v24  ;;  %v596_v27 = vsel %vm327_vm0, %v594_v24, %v592_v25 }
 0x2ce   : > { %v1548_v28 = vmul.f32 %v595_v26, %v1386_v13  ;;  %v1551_v30 = vmul.f32 %v596_v27, %v1388_v14 }
 0x2d0   : > { %v601_v31 = vpack.c.bf16 %v1548_v28, %v1548_v28  ;;  %v602_v32 = vpack.c.bf16 %v1551_v30, %v1551_v30 }
 0x2d2   : > { %v615_v33 = vsel %vm371_vm3, %v601_v31, 0  ;;  %v618_v34 = vsel %vm371_vm3, %v602_v32, 0 }
 0x2d3   : > { %626 = vmatpush.bf16.msrb.mxu0 %v615_v33  ;;  %639 = vmatpush.bf16.msrb.mxu1 %v618_v34  ;;  %v681_v33 = vpack.c.b16 %v680_v10, %v680_v10 }
 0x2d4   : > { %v584_v36 = vpop.permute.xlu1 %583 }
 0x2d5   : > { %v587_v39 = vsel %vm257_vm8, %v584_v36, %v586_v35  ;;  %v588_v40 = vsel %vm257_vm8, %v586_v35, %v584_v36 }
 0x2d6   : > { %v1564_v41 = vmul.f32 %v588_v40, %v1423_v16  ;;  %v1567_v42 = vmul.f32 %v587_v39, %v1425_v17  ;;  %v809_v40 = vpack.c.bf16 %v1548_v28, %v1531_v20 }
 0x2d8   : > { %v599_v43 = vpack.c.bf16 %v1531_v20, %v1564_v41  ;;  %v600_v44 = vpack.c.bf16 %v1533_v21, %v1567_v42 }
 0x2da   : > { %627 = vmatpush.bf16.msrb.mxu0 %v599_v43  ;;  %640 = vmatpush.bf16.msrb.mxu1 %v600_v44 }
 0x2dd   : > { %1224 = vmatmul.msk.bf16.vlgmr.msrb.gmra.mxu0 %vm610_vm9, %v202_v45  ;;  %1225 = vmatmul.msk.bf16.vlgmr.msrb.gmra.mxu1 %vm610_vm9, %v202_v45  ;;  %v810_v45 = vpack.c.bf16 %v1551_v30, %v1533_v21 }
 0x35a   : > { %v629_v47 = vpop.f32.mrf.mxu0  ;;  %v642_v37 = vpop.f32.mrf.mxu1 }
 0x35b   : > { %v630_v48 = vadd.f32 %v629_v47, %v608_v46  ;;  %v643_v38 = vadd.f32 %v642_v37, %v608_v46 }
 0x35d   : > { %v648_v49 = vmul.f32 0.01, %v630_v48  ;;  %v649_v50 = vmul.f32 0.01, %v643_v38  ;;  %vm647_vm10 = vcmp.ge.f32.partialorder %v643_v38, 0.0  ;;  %vm646_vm11 = vcmp.ge.f32.partialorder %v630_v48, 0.0 }
 0x35f   : > { %v651_v51 = vsel %vm647_vm10, %v643_v38, %v649_v50  ;;  %v650_v54 = vsel %vm646_vm11, %v630_v48, %v648_v49  ;;  %v1635_v48 = vld [vmem:[%s1789_s2 + $0x10] sm:$0xff] }
 0x360   : > { %662 = vrot.lane.b32.xlu2 %v651_v51, %s1294_s23  ;;  %652 = vrot.lane.b32.xlu0 %v650_v54, %s1299_s28  ;;  %v821_v38 = vunpack.c.h.b16 %v1635_v48 }
 0x361   : > { %660 = vrot.lane.b32.xlu1 %v650_v54, %s1294_s23 }
 0x362   : > { %v631_v55 = vpop.f32.mrf.mxu0  ;;  %v644_v56 = vpop.f32.mrf.mxu1  ;;  %v822_v30 = vpack.c.b16 %v821_v38, %v821_v38 }
 0x368   : > { %799 = vrot.lane.b32.xlu2 %v1531_v20, %s1303_s29  ;;  %801 = vrot.lane.b32.xlu0 %v1533_v21, %s1303_s29 }
 0x369   : > { %654 = vrot.lane.b32.xlu1 %v651_v51, %s1299_s28 }
 0x370   : > { %793 = vrot.lane.b32.xlu2 %v1533_v21, %s1307_s7  ;;  %676 = vperm.xlu0 %1274, %v1226_v57  }
 0x371   : > { %791 = vrot.lane.b32.xlu1 %v1531_v20, %s1307_s7 }
 0x379   : > { %817 = vperm.xlu1 %1273, %v1232_v58  }
 0x3ba   : > { %v663_v59 = vpop.permute.xlu2 %662 }
 0x3c2   : > { %v800_v7 = vpop.permute.xlu2 %799 }
 0x3ca   : > { %v794_v36 = vpop.permute.xlu2 %793 }
 0x3d2   : > { %v653_v60 = vpop.permute.xlu0 %652 }
 0x3d3   : > { %v661_v63 = vpop.permute.xlu1 %660 }
 0x3d4   : > { %v664_v0 = vsel %vm327_vm0, %v661_v63, %v663_v59  ;;  %v665_v1 = vsel %vm327_vm0, %v663_v59, %v661_v63 }
 0x3d5   : > { %v666_v2 = vmul.f32 %v664_v0, %v1386_v13  ;;  %v667_v3 = vmul.f32 %v665_v1, %v1388_v14 }
 0x3d7   : > { %v670_v4 = vpack.c.bf16 %v666_v2, %v666_v2  ;;  %v671_v5 = vpack.c.bf16 %v667_v3, %v667_v3 }
 0x3d9   : > { %v686_v8 = vsel %vm371_vm3, %v670_v4, 0  ;;  %v689_v9 = vsel %vm371_vm3, %v671_v5, 0 }
 0x3da   : > { %697 = vmatpush.bf16.msrb.mxu2 %v686_v8  ;;  %710 = vmatpush.bf16.msrb.mxu3 %v689_v9  ;;  %v802_v29 = vpop.permute.xlu0 %801 }
 0x3db   : > { %v803_v11 = vsel %vm498_vm14, %v800_v7, %v802_v29  ;;  %v804_v12 = vsel %vm498_vm14, %v802_v29, %v800_v7  ;;  %v655_v15 = vpop.permute.xlu1 %654 }
 0x3dc   : > { %v805_v18 = vmul.f32 %v803_v11, %v1480_v61  ;;  %v806_v19 = vmul.f32 %v804_v12, %v1482_v62  ;;  %v656_v22 = vsel %vm257_vm8, %v653_v60, %v655_v15  ;;  %v657_v23 = vsel %vm257_vm8, %v655_v15, %v653_v60 }
 0x3dd   : > { %v658_v24 = vmul.f32 %v657_v23, %v1423_v16  ;;  %v659_v25 = vmul.f32 %v656_v22, %v1425_v17 }
 0x3de   : > { %v811_v26 = vpack.c.bf16 %v805_v18, %v805_v18  ;;  %v812_v27 = vpack.c.bf16 %v806_v19, %v806_v19 }
 0x3df   : > { %v668_v31 = vpack.c.bf16 %v650_v54, %v658_v24  ;;  %v669_v32 = vpack.c.bf16 %v651_v51, %v659_v25 }
 0x3e0   : > { %v828_v34 = vsel %vm371_vm3, %v811_v26, 0  ;;  %v831_v35 = vsel %vm371_vm3, %v812_v27, 0 }
 0x3e1   : > { %698 = vmatpush.bf16.msrb.mxu2 %v668_v31  ;;  %711 = vmatpush.bf16.msrb.mxu3 %v669_v32 }
 0x3e2   : > { %v677_v49 = vpop.permute.xlu0 %676 }
 0x3e3   : > { %v792_v39 = vpop.permute.xlu1 %791 }
 0x3e4   : > { %v795_v43 = vsel %vm428_vm4, %v792_v39, %v794_v36  ;;  %v796_v44 = vsel %vm428_vm4, %v794_v36, %v792_v39  ;;  %1227 = vmatmul.msk.bf16.vlgmr.msrb.gmra.mxu2 %vm610_vm9, %v681_v33  ;;  %1228 = vmatmul.msk.bf16.vlgmr.msrb.gmra.mxu3 %vm610_vm9, %v681_v33  ;;  %v1235_v36 = vld [vmem:[%s1790_s3 + $0x30] sm:$0xff] }
 0x3e5   : > { %838 = vmatpush.bf16.msra.mxu2 %v828_v34  ;;  %851 = vmatpush.bf16.msra.mxu3 %v831_v35  ;;  %v797_v46 = vmul.f32 %v796_v44, %v1517_v52  ;;  %v798_v47 = vmul.f32 %v795_v43, %v1519_v53 }
 0x3e7   : > { %v807_v28 = vpack.c.bf16 %v1564_v41, %v797_v46  ;;  %v808_v37 = vpack.c.bf16 %v1567_v42, %v798_v47 }
 0x3e9   : > { %839 = vmatpush.bf16.msra.mxu2 %v809_v40  ;;  %852 = vmatpush.bf16.msra.mxu3 %v810_v45 }
 0x3eb   : > { %v818_v60 = vpop.permute.xlu1 %817 }
 0x3ed   : > { %840 = vmatpush.bf16.msra.mxu2 %v807_v28  ;;  %853 = vmatpush.bf16.msra.mxu3 %v808_v37 }
 0x3f4   : > { %1233 = vmatmul.msk.bf16.vlgmr.msra.gmra.mxu2 %vm823_vm12, %v822_v30  ;;  %1234 = vmatmul.msk.bf16.vlgmr.msra.gmra.mxu3 %vm823_vm12, %v822_v30 }
 0x467   : > { %v700_v50 = vpop.f32.mrf.mxu2  ;;  %v713_v41 = vpop.f32.mrf.mxu3 }
 0x468   : > { %v701_v51 = vadd.f32 %v700_v50, %v677_v49  ;;  %v714_v42 = vadd.f32 %v713_v41, %v677_v49 }
 0x46a   : > { %v719_v54 = vmul.f32 0.01, %v701_v51  ;;  %v720_v55 = vmul.f32 0.01, %v714_v42  ;;  %vm717_vm13 = vcmp.ge.f32.partialorder %v701_v51, 0.0  ;;  %vm718_vm15 = vcmp.ge.f32.partialorder %v714_v42, 0.0 }
 0x46c   : > { %v721_v56 = vsel %vm717_vm13, %v701_v51, %v719_v54  ;;  %v722_v57 = vsel %vm718_vm15, %v714_v42, %v720_v55 }
 0x46d   : > { %723 = vrot.lane.b32.xlu1 %v721_v56, %s1299_s28  ;;  %731 = vrot.lane.b32.xlu2 %v721_v56, %s1294_s23 }
 0x46e   : > { %733 = vrot.lane.b32.xlu0 %v722_v57, %s1294_s23 }
 0x46f   : > { %v702_v58 = vpop.f32.mrf.mxu2  ;;  %v715_v59 = vpop.f32.mrf.mxu3 }
 0x475   : > { %725 = vrot.lane.b32.xlu2 %v722_v57, %s1299_s28 }
 0x477   : > { %v842_v63 = vpop.f32.mrf.mxu2  ;;  %v855_v0 = vpop.f32.mrf.mxu3 }
 0x478   : > { %v843_v1 = vadd.f32 %v842_v63, %v818_v60  ;;  %v856_v2 = vadd.f32 %v855_v0, %v818_v60 }
 0x47a   : > { %vm859_vm1 = vcmp.ge.f32.partialorder %v843_v1, 0.0  ;;  %v861_v3 = vmul.f32 0.01, %v843_v1  ;;  %vm860_vm2 = vcmp.ge.f32.partialorder %v856_v2, 0.0  ;;  %v862_v4 = vmul.f32 0.01, %v856_v2 }
 0x47c   : > { %v863_v5 = vsel %vm859_vm1, %v843_v1, %v861_v3  ;;  %v864_v7 = vsel %vm860_vm2, %v856_v2, %v862_v4  ;;  %v1040_v1 = vpack.c.bf16 %v1531_v20, %v1531_v20  ;;  %v1041_v2 = vpack.c.bf16 %v1533_v21, %v1533_v21  ;;  %v1708_v20 = vld [vmem:[%s1789_s2 + $0x18] sm:$0xff] }
 0x47d   : > { %891 = vrot.lane.b32.xlu1 %v864_v7, %s1303_s29  ;;  %881 = vrot.lane.b32.xlu2 %v863_v5, %s1294_s23 }
 0x47e   : > { %889 = vrot.lane.b32.xlu0 %v863_v5, %s1303_s29 }
 0x47f   : > { %v844_v8 = vpop.f32.mrf.mxu2  ;;  %v857_v9 = vpop.f32.mrf.mxu3 }
 0x485   : > { %865 = vrot.lane.b32.xlu1 %v863_v5, %s1307_s7  ;;  %867 = vrot.lane.b32.xlu2 %v864_v7, %s1307_s7 }
 0x486   : > { %883 = vrot.lane.b32.xlu0 %v864_v7, %s1294_s23 }
 0x48d   : > { %875 = vrot.lane.b32.xlu1 %v864_v7, %s1299_s28  ;;  %907 = vperm.xlu2 %1275, %v1235_v36   ;;  %v1238_v36 = vld [vmem:[%s1790_s3 + $0x38] sm:$0xff] }
 0x48e   : > { %873 = vrot.lane.b32.xlu0 %v863_v5, %s1299_s28 }
 0x4c7   : > { %v732_v29 = vpop.permute.xlu2 %731 }
 0x4cf   : > { %v726_v12 = vpop.permute.xlu2 %725 }
 0x4d7   : > { %v882_v47 = vpop.permute.xlu2 %881 }
 0x4df   : > { %v724_v10 = vpop.permute.xlu1 %723 }
 0x4e0   : > { %v734_v11 = vpop.permute.xlu0 %733  ;;  %v727_v23 = vsel %vm257_vm8, %v724_v10, %v726_v12  ;;  %v728_v24 = vsel %vm257_vm8, %v726_v12, %v724_v10  ;;  %v1057_v10 = vsel %vm371_vm3, %v1041_v2, 0  ;;  %v997_v2 = vunpack.c.h.b16 %v1708_v20 }
 0x4e1   : > { %v735_v15 = vsel %vm327_vm0, %v732_v29, %v734_v11  ;;  %v736_v18 = vsel %vm327_vm0, %v734_v11, %v732_v29  ;;  %v729_v27 = vmul.f32 %v728_v24, %v1423_v16  ;;  %v730_v31 = vmul.f32 %v727_v23, %v1425_v17 }
 0x4e2   : > { %v737_v19 = vmul.f32 %v735_v15, %v1386_v13  ;;  %v738_v22 = vmul.f32 %v736_v18, %v1388_v14  ;;  %v1054_v29 = vsel %vm371_vm3, %v1040_v1, 0  ;;  %v205_v18 = vld [vmem:[%s1789_s2 + $0x20] sm:$0xf] }
 0x4e3   : > { %v739_v34 = vpack.c.bf16 %v721_v56, %v729_v27  ;;  %v740_v35 = vpack.c.bf16 %v722_v57, %v730_v31  ;;  %v868_v56 = vpop.permute.xlu2 %867 }
 0x4e4   : > { %v741_v25 = vpack.c.bf16 %v737_v19, %v737_v19  ;;  %v742_v26 = vpack.c.bf16 %v738_v22, %v738_v22 }
 0x4e6   : > { %v754_v32 = vsel %vm371_vm3, %v741_v25, 0  ;;  %v757_v33 = vsel %vm371_vm3, %v742_v26, 0 }
 0x4e7   : > { %765 = vmatpush.bf16.msra.mxu0 %v754_v32  ;;  %778 = vmatpush.bf16.msra.mxu1 %v757_v33 }
 0x4eb   : > { %766 = vmatpush.bf16.msra.mxu0 %v739_v34  ;;  %779 = vmatpush.bf16.msra.mxu1 %v740_v35  ;;  %v908_v19 = vpop.permute.xlu2 %907  ;;  %v1229_v35 = vld [vmem:[%s1790_s3 + $0x20] sm:$0xff] }
 0x4ee   : > { %1230 = vmatmul.msk.bf16.vlgmr.msra.gmra.mxu0 %vm610_vm9, %v1635_v48  ;;  %1231 = vmatmul.msk.bf16.vlgmr.msra.gmra.mxu1 %vm610_vm9, %v1635_v48 }
 0x4ef   : > { %v892_v39 = vpop.permute.xlu1 %891 }
 0x4f0   : > { %v890_v40 = vpop.permute.xlu0 %889 }
 0x4f1   : > { %v893_v43 = vsel %vm498_vm14, %v890_v40, %v892_v39  ;;  %v894_v44 = vsel %vm498_vm14, %v892_v39, %v890_v40  ;;  %v1241_v39 = vld [vmem:[%s1790_s3 + $0x40] sm:$0xff] }
 0x4f2   : > { %v895_v45 = vmul.f32 %v893_v43, %v1480_v61  ;;  %v896_v46 = vmul.f32 %v894_v44, %v1482_v62 }
 0x4f4   : > { %v901_v28 = vpack.c.bf16 %v895_v45, %v895_v45  ;;  %v902_v37 = vpack.c.bf16 %v896_v46, %v896_v46 }
 0x4f6   : > { %v914_v38 = vsel %vm371_vm3, %v901_v28, 0  ;;  %v917_v30 = vsel %vm371_vm3, %v902_v37, 0 }
 0x4f7   : > { %924 = vmatpush.bf16.msrb.mxu0 %v914_v38  ;;  %937 = vmatpush.bf16.msrb.mxu1 %v917_v30  ;;  %v866_v48 = vpop.permute.xlu1 %865 }
 0x4f8   : > { %v884_v49 = vpop.permute.xlu0 %883  ;;  %v869_v57 = vsel %vm428_vm4, %v866_v48, %v868_v56  ;;  %v870_v58 = vsel %vm428_vm4, %v868_v56, %v866_v48 }
 0x4f9   : > { %v885_v50 = vsel %vm327_vm0, %v882_v47, %v884_v49  ;;  %v886_v41 = vsel %vm327_vm0, %v884_v49, %v882_v47  ;;  %v871_v3 = vmul.f32 %v870_v58, %v1517_v52  ;;  %v872_v4 = vmul.f32 %v869_v57, %v1519_v53 }
 0x4fa   : > { %v887_v51 = vmul.f32 %v885_v50, %v1386_v13  ;;  %v888_v42 = vmul.f32 %v886_v41, %v1388_v14 }
 0x4fc   : > { %v899_v54 = vpack.c.bf16 %v887_v51, %v863_v5  ;;  %v900_v55 = vpack.c.bf16 %v888_v42, %v864_v7 }
 0x4fe   : > { %925 = vmatpush.bf16.msrb.mxu0 %v899_v54  ;;  %938 = vmatpush.bf16.msrb.mxu1 %v900_v55 }
 0x4ff   : > { %v876_v59 = vpop.permute.xlu1 %875 }
 0x500   : > { %v874_v60 = vpop.permute.xlu0 %873 }
 0x501   : > { %v877_v63 = vsel %vm257_vm8, %v874_v60, %v876_v59  ;;  %v878_v0 = vsel %vm257_vm8, %v876_v59, %v874_v60 }
 0x502   : > { %v879_v5 = vmul.f32 %v878_v0, %v1423_v16  ;;  %v880_v7 = vmul.f32 %v877_v63, %v1425_v17 }
 0x504   : > { %v897_v8 = vpack.c.bf16 %v879_v5, %v871_v3  ;;  %v898_v9 = vpack.c.bf16 %v880_v7, %v872_v4 }
 0x506   : > { %926 = vmatpush.bf16.msrb.mxu0 %v897_v8  ;;  %939 = vmatpush.bf16.msrb.mxu1 %v898_v9 }
 0x509   : > { %1236 = vmatmul.msk.bf16.vlgmr.msrb.gmra.mxu0 %vm823_vm12, %v1708_v20  ;;  %1237 = vmatmul.msk.bf16.vlgmr.msrb.gmra.mxu1 %vm823_vm12, %v1708_v20 }
 0x50a   : > { %1066 = vmatpush.bf16.msra.mxu0 %v1054_v29  ;;  %1079 = vmatpush.bf16.msra.mxu1 %v1057_v10  ;;  %v998_v29 = vpack.c.b16 %v997_v2, %v997_v2 }
 0x519   : > { %1242 = vmatmul.msk.bf16.vlgmr.msra.gmra.mxu0 %vm1049_vm5, %v205_v18  ;;  %1243 = vmatmul.msk.bf16.vlgmr.msra.gmra.mxu1 %vm1049_vm5, %v205_v18 }
 0x56b   : > { %v1714_v21 = vpop.f32.mrf.mxu0  ;;  %v1716_v11 = vpop.f32.mrf.mxu1 }
 0x573   : > { %v770_v12 = vpop.f32.mrf.mxu0  ;;  %v783_v15 = vpop.f32.mrf.mxu1 }
 0x586   : > { %v928_v22 = vpop.f32.mrf.mxu0  ;;  %v941_v23 = vpop.f32.mrf.mxu1 }
 0x587   : > { %v929_v24 = vadd.f32 %v928_v22, %v908_v19  ;;  %v942_v25 = vadd.f32 %v941_v23, %v908_v19 }
 0x589   : > { %vm945_vm6 = vcmp.ge.f32.partialorder %v929_v24, 0.0  ;;  %v947_v26 = vmul.f32 0.01, %v929_v24  ;;  %vm946_vm7 = vcmp.ge.f32.partialorder %v942_v25, 0.0  ;;  %v948_v27 = vmul.f32 0.01, %v942_v25 }
 0x58b   : > { %v949_v31 = vsel %vm945_vm6, %v929_v24, %v947_v26  ;;  %v950_v32 = vsel %vm946_vm7, %v942_v25, %v948_v27 }
 0x58c   : > { %967 = vrot.lane.b32.xlu2 %v949_v31, %s1294_s23  ;;  %975 = vrot.lane.b32.xlu0 %v949_v31, %s1303_s29 }
 0x58d   : > { %977 = vrot.lane.b32.xlu1 %v950_v32, %s1303_s29 }
 0x58e   : > { %v930_v33 = vpop.f32.mrf.mxu0  ;;  %v943_v34 = vpop.f32.mrf.mxu1 }
 0x594   : > { %953 = vrot.lane.b32.xlu2 %v950_v32, %s1307_s7  ;;  %969 = vrot.lane.b32.xlu0 %v950_v32, %s1294_s23  ;;  %s1247_s23 = sshll.u32 %s1793_s16, 3 }
 0x595   : > { %951 = vrot.lane.b32.xlu1 %v949_v31, %s1307_s7  ;;  %s197_s8 = scalar_lea.vmem %s1791_s4, %s1247_s23 }
 0x596   : > { %v1738_v40 = vpop.f32.mrf.mxu0  ;;  %v1740_v43 = vpop.f32.mrf.mxu1 }
 0x59c   : > { %747 = vperm.xlu2 %1275, %v1229_v35   ;;  %959 = vrot.lane.b32.xlu0 %v949_v31, %s1299_s28 }
 0x59d   : > { %961 = vrot.lane.b32.xlu1 %v950_v32, %s1299_s28 }
 0x59e   : > { %v1083_v44 = vpop.f32.mrf.mxu1  ;;  %v1070_v45 = vpop.f32.mrf.mxu0 }
 0x5a4   : > { %993 = vperm.xlu0 %1274, %v1238_v36  }
 0x5a5   : > { %1046 = vperm.xlu1 %1273, %v1241_v39  }
 0x5e6   : > { %v968_v48 = vpop.permute.xlu2 %967 }
 0x5ee   : > { %v954_v59 = vpop.permute.xlu2 %953 }
 0x5f6   : > { %v748_v10 = vpop.permute.xlu2 %747 }
 0x5f7   : > { %v769_v6 = vadd.f32 %v1714_v21, %v748_v10 }
 0x5fe   : > { %v976_v46 = vpop.permute.xlu0 %975 }
 0x5ff   : > { %v978_v47 = vpop.permute.xlu1 %977 }
 0x600   : > { %v979_v28 = vsel %vm498_vm14, %v976_v46, %v978_v47  ;;  %v980_v37 = vsel %vm498_vm14, %v978_v47, %v976_v46 }
 0x601   : > { %v981_v38 = vmul.f32 %v979_v28, %v1480_v61  ;;  %v982_v30 = vmul.f32 %v980_v37, %v1482_v62 }
 0x603   : > { %v987_v49 = vpack.c.bf16 %v981_v38, %v981_v38  ;;  %v988_v50 = vpack.c.bf16 %v982_v30, %v982_v30 }
 0x605   : > { %v1003_v41 = vsel %vm371_vm3, %v987_v49, 0  ;;  %v1006_v51 = vsel %vm371_vm3, %v988_v50, 0 }
 0x606   : > { %v970_v42 = vpop.permute.xlu0 %969  ;;  %1013 = vmatpush.bf16.msrb.mxu2 %v1003_v41  ;;  %1026 = vmatpush.bf16.msrb.mxu3 %v1006_v51 }
 0x607   : > { %v971_v54 = vsel %vm327_vm0, %v968_v48, %v970_v42  ;;  %v972_v55 = vsel %vm327_vm0, %v970_v42, %v968_v48  ;;  %v952_v56 = vpop.permute.xlu1 %951  ;;  %vm785_vm0 = vcmp.ge.f32.partialorder %v769_v6, 0.0 }
 0x608   : > { %v973_v61 = vmul.f32 %v971_v54, %v1386_v13  ;;  %v974_v62 = vmul.f32 %v972_v55, %v1388_v14  ;;  %v955_v60 = vsel %vm428_vm4, %v952_v56, %v954_v59  ;;  %v956_v63 = vsel %vm428_vm4, %v954_v59, %v952_v56 }
 0x609   : > { %v957_v3 = vmul.f32 %v956_v63, %v1517_v52  ;;  %v958_v4 = vmul.f32 %v955_v60, %v1519_v53  ;;  %v782_v52 = vadd.f32 %v1716_v11, %v748_v10 }
 0x60a   : > { %v985_v57 = vpack.c.bf16 %v973_v61, %v949_v31  ;;  %v986_v58 = vpack.c.bf16 %v974_v62, %v950_v32 }
 0x60b   : > { %v788_v15 = vmul.f32 0.01, %v782_v52 }
 0x60c   : > { %1014 = vmatpush.bf16.msrb.mxu2 %v985_v57  ;;  %1027 = vmatpush.bf16.msrb.mxu3 %v986_v58 }
 0x60e   : > { %v960_v0 = vpop.permute.xlu0 %959 }
 0x60f   : > { %v962_v1 = vpop.permute.xlu1 %961 }
 0x610   : > { %v963_v13 = vsel %vm257_vm8, %v960_v0, %v962_v1  ;;  %v964_v14 = vsel %vm257_vm8, %v962_v1, %v960_v0  ;;  %vm786_vm8 = vcmp.ge.f32.partialorder %v782_v52, 0.0 }
 0x611   : > { %v965_v5 = vmul.f32 %v964_v14, %v1423_v16  ;;  %v966_v7 = vmul.f32 %v963_v13, %v1425_v17  ;;  %v787_v16 = vmul.f32 0.01, %v769_v6  ;;  %v790_v24 = vsel %vm786_vm8, %v782_v52, %v788_v15 }
 0x613   : > { %v983_v8 = vpack.c.bf16 %v965_v5, %v957_v3  ;;  %v984_v9 = vpack.c.bf16 %v966_v7, %v958_v4  ;;  %v789_v23 = vsel %vm785_vm0, %v769_v6, %v787_v16 }
 0x615   : > { %1015 = vmatpush.bf16.msrb.mxu2 %v983_v8  ;;  %1028 = vmatpush.bf16.msrb.mxu3 %v984_v9 }
 0x616   : > { %v994_v20 = vpop.permute.xlu0 %993 }
 0x617   : > { %v1047_v2 = vpop.permute.xlu1 %1046 }
 0x618   : > { %1239 = vmatmul.msk.bf16.vlgmr.msrb.gmra.mxu2 %vm823_vm12, %v998_v29  ;;  %1240 = vmatmul.msk.bf16.vlgmr.msrb.gmra.mxu3 %vm823_vm12, %v998_v29  ;;  %v1082_v3 = vadd.f32 %v1740_v43, %v1047_v2  ;;  %v1069_v4 = vadd.f32 %v1738_v40, %v1047_v2 }
 0x61a   : > { %v1088_v5 = vmul.f32 0.01, %v1082_v3  ;;  %vm1086_vm9 = vcmp.ge.f32.partialorder %v1082_v3, 0.0  ;;  %v1087_v9 = vmul.f32 0.01, %v1069_v4  ;;  %vm1085_vm10 = vcmp.ge.f32.partialorder %v1069_v4, 0.0 }
 0x61c   : > { %v1090_v6 = vsel %vm1086_vm9, %v1082_v3, %v1088_v5 }
 0x69b   : > { %v1017_v53 = vpop.f32.mrf.mxu2  ;;  %v1030_v12 = vpop.f32.mrf.mxu3 }
 0x69c   : > { %v1018_v17 = vadd.f32 %v1017_v53, %v994_v20  ;;  %v1031_v18 = vadd.f32 %v1030_v12, %v994_v20  ;;  %v1089_v20 = vsel %vm1085_vm10, %v1069_v4, %v1087_v9 }
 0x69e   : > { %vm1034_vm14 = vcmp.ge.f32.partialorder %v1018_v17, 0.0  ;;  %v1036_v19 = vmul.f32 0.01, %v1018_v17  ;;  %vm1035_vm4 = vcmp.ge.f32.partialorder %v1031_v18, 0.0  ;;  %v1037_v22 = vmul.f32 0.01, %v1031_v18 }
 0x6a0   : > { %v1038_v25 = vsel %vm1034_vm14, %v1018_v17, %v1036_v19  ;;  %v1039_v26 = vsel %vm1035_vm4, %v1031_v18, %v1037_v22 }
 0x6a1   : > { %v1091_v21 = vadd.f32 %v1038_v25, %v789_v23  ;;  %v1092_v27 = vadd.f32 %v1039_v26, %v790_v24 }
 0x6a3   : > { %v1093_v11 = vsel %vm371_vm3, %v1091_v21, -inf  ;;  %v1100_v31 = vsel %vm371_vm3, %v1092_v27, -inf  ;;  %v1019_v32 = vpop.f32.mrf.mxu2  ;;  %v1032_v33 = vpop.f32.mrf.mxu3 }
 0x6a4   : > { %v1094_v34 = vrot.slane %v1093_v11, 4  ;;  %v1101_v35 = vrot.slane %v1100_v31, 4 }
 0x6a6   : > { %v1095_v36 = vmax.f32 %v1093_v11, %v1094_v34  ;;  %v1102_v39 = vmax.f32 %v1100_v31, %v1101_v35 }
 0x6a8   : > { %v1096_v44 = vrot.slane %v1095_v36, 2  ;;  %v1103_v45 = vrot.slane %v1102_v39, 2 }
 0x6aa   : > { %v1097_v46 = vmax.f32 %v1095_v36, %v1096_v44  ;;  %v1104_v47 = vmax.f32 %v1102_v39, %v1103_v45 }
 0x6ac   : > { %v1098_v28 = vrot.slane %v1097_v46, 1  ;;  %v1105_v37 = vrot.slane %v1104_v47, 1 }
 0x6ae   : > { %v1099_v38 = vmax.f32 %v1097_v46, %v1098_v28  ;;  %v1106_v30 = vmax.f32 %v1104_v47, %v1105_v37 }
 0x6b0   : > { %v1107_v48 = vsub.f32 %v1091_v21, %v1099_v38  ;;  %v1108_v49 = vsub.f32 %v1092_v27, %v1106_v30 }
 0x6b2   : > { %v1109_v50 = vmul.f32 1.442695, %v1107_v48  ;;  %v1111_v41 = vmul.f32 1.442695, %v1108_v49 }
 0x6b4   : > { %1276 = vpow2.f32 %v1109_v50 }
 0x6b5   : > { %1278 = vpow2.f32 %v1111_v41 }
 0x6ba   : > { %v1277_v51 = vpop.eup %1276 }
 0x6bb   : > { %v1279_v42 = vpop.eup %1278  ;;  %v1113_v54 = vsel %vm371_vm3, %v1277_v51, 0.0 }
 0x6bc   : > { %v1114_v55 = vrot.slane %v1113_v54, 4  ;;  %v1120_v56 = vsel %vm371_vm3, %v1279_v42, 0.0 }
 0x6bd   : > { %v1121_v61 = vrot.slane %v1120_v56, 4 }
 0x6be   : > { %v1115_v62 = vadd.f32 %v1114_v55, %v1113_v54 }
 0x6bf   : > { %v1122_v57 = vadd.f32 %v1121_v61, %v1120_v56 }
 0x6c0   : > { %v1116_v58 = vrot.slane %v1115_v62, 2 }
 0x6c1   : > { %v1123_v59 = vrot.slane %v1122_v57, 2 }
 0x6c2   : > { %v1117_v60 = vadd.f32 %v1116_v58, %v1115_v62 }
 0x6c3   : > { %v1124_v63 = vadd.f32 %v1123_v59, %v1122_v57 }
 0x6c4   : > { %v1118_v0 = vrot.slane %v1117_v60, 1 }
 0x6c5   : > { %v1125_v1 = vrot.slane %v1124_v63, 1 }
 0x6c6   : > { %v1119_v13 = vadd.f32 %v1118_v0, %v1117_v60 }
 0x6c7   : > { %v1126_v14 = vadd.f32 %v1125_v1, %v1124_v63 }
 0x6c8   : > { %1280 = vrcp.f32 %v1119_v13 }
 0x6c9   : > { %1282 = vrcp.f32 %v1126_v14 }
 0x6ce   : > { %v1281_v7 = vpop.eup %1280 }
 0x6cf   : > { %v1283_v8 = vpop.eup %1282  ;;  %v1129_v29 = vmul.f32 %v1281_v7, %v1277_v51 }
 0x6d0   : > { %v1130_v10 = vmul.f32 %v1283_v8, %v1279_v42 }
 0x6d1   : > { %v1131_v53 = vmul.f32 %v1129_v29, %v1089_v20 }
 0x6d2   : > { %v1132_v52 = vmul.f32 %v1130_v10, %v1090_v6 }
 0x6d4   : > { %v1135_v43 = vrot.slane %v1132_v52, 4 }
 0x6d6   : > { %v1136_v40 = vsel %vm371_vm3, %v1131_v53, %v1135_v43 }
 0x6d7   : > { %1138 = vst [vmem:[%s197_s8] sm:$0xff] %v1136_v40 }
 0x6d8 PF: > { %s14_s15 = sadd.s32 1, %s1290_s15  }
 0x6d9   : > { %p11_p4 = scmp.ge.s32.totalorder %s14_s15, 4  }
 0x6db   :  { %13 = sbr.rel (!%p11_p4) target bundleno = 1 (0x1), region = 89 }

</bundles_post_ra>
